<compile_context>
chip_gen: v7x
topology: tpu7x:2x2x1
jax: 0.10.0
libtpu: 0.0.40
codegen_flags: <defaults>
</compile_context>

<pallas_src>
import functools

import numpy as np
import jax
import jax.numpy as jnp
from jax import lax
from jax.experimental import pallas as pl
from jax.experimental.pallas import tpu as pltpu

LEAK = 0.01      # nn.LeakyReLU default negative_slope
BN_EPS = 1e-5    # nn.BatchNorm2d default eps

VMEM_SPEC = pl.BlockSpec(memory_space=pltpu.MemorySpace.VMEM)


# ---------------------------------------------------------------------------
# In-kernel helpers
# ---------------------------------------------------------------------------
def _shift_lanes(a, off, n):
    """out[:, p] = a[:, p + off] if 0 <= p + off < n else 0 (zero 'same' padding)."""
    if off == 0:
        return a
    if abs(off) >= n:
        return jnp.zeros_like(a)
    pad = jnp.zeros((a.shape[0], abs(off)), a.dtype)
    if off > 0:
        return jnp.concatenate([a[:, off:], pad], axis=1)
    return jnp.concatenate([pad, a[:, :off]], axis=1)


# ---------------------------------------------------------------------------
# The single fused kernel
# ---------------------------------------------------------------------------
def fused_generator_kernel(
        x_ref, noise_ref,
        ew1_ref, eb1_ref, ew2_ref, eb2_ref, fw_ref, fb_ref,
        u1_ref, u2_ref, u3_ref, u4_ref,
        m1_ref, m2_ref, m3_ref, m4_ref,
        w1_ref, cb1_ref, w2_ref, cb2_ref, w3_ref, cb3_ref, w4_ref, cb4_ref,
        pm1_ref, pm2_ref, pm3_ref,
        bg1_ref, bb1_ref, bg2_ref, bb2_ref, bg3_ref, bb3_ref,
        out_ref,
        *, C0, S0, K, stage_hw, stage_w):
    f32 = jnp.float32
    bf16 = jnp.bfloat16

    # ---- emb = consts[0] * Linear(LeakyReLU(Linear(cat(momentum, point)))) (c0 folded)
    # kept f32: tiny matmuls, and emb multiplies the noise so keep it exact.
    h = jnp.dot(x_ref[...], ew1_ref[...], preferred_element_type=f32) + eb1_ref[...]
    h = jnp.where(h > 0, h, LEAK * h)
    emb = jnp.dot(h, ew2_ref[...], preferred_element_type=f32) + eb2_ref[...]

    # ---- LeakyReLU(consts[1] * Linear(noise * emb))  (c1 folded)
    z = noise_ref[...] * emb
    fc = jnp.dot(z, fw_ref[...], preferred_element_type=f32) + fb_ref[...]   # (B, C0*S0)
    fc = jnp.where(fc > 0, fc, LEAK * fc)

    # ---- Unflatten to channel-major image rows: act[c*B + b, s] = fc[b, c*S0 + s]
    act = jnp.concatenate([fc[:, c * S0:(c + 1) * S0] for c in range(C0)], axis=0)

    u_refs = (u1_ref, u2_ref, u3_ref, u4_ref)
    m_refs = (m1_ref, m2_ref, m3_ref, m4_ref)
    w_refs = (w1_ref, w2_ref, w3_ref, w4_ref)
    cb_refs = (cb1_ref, cb2_ref, cb3_ref, cb4_ref)
    pm_refs = (pm1_ref, pm2_ref, pm3_ref)
    bg_refs = (bg1_ref, bg2_ref, bg3_ref)
    bb_refs = (bb1_ref, bb2_ref, bb3_ref)

    r = K // 2
    for i in range(4):
        hw = stage_hw[i]
        wout = stage_w[i]

        # nearest upsample: one bf16 matmul against the 0/1 selection matrix U
        up = jnp.dot(act.astype(bf16), u_refs[i][...], preferred_element_type=f32)
        upb = up.astype(bf16)   # exact: each column is a plain copy of a bf16 value

        # KxK conv taps of the zero-padded image: static lane shifts + column masks
        taps = []
        for dy in range(K):
            for dx in range(K):
                off = (dy - r) * wout + (dx - r)
                tap = _shift_lanes(upb, off, hw)
                if dx != r:
                    tap = tap * m_refs[i][dx:dx + 1, :]
                taps.append(tap)
        xcol = jnp.concatenate(taps, axis=0)                     # (K*K*Cin*B, hw) bf16

        # conv as ONE bf16 matmul (batch-block weight, consts folded), f32 accumulate
        y = jnp.dot(w_refs[i][...], xcol, preferred_element_type=f32) + cb_refs[i][...]

        if i == 3:
            # final stage: conv(C3 -> 1) -> consts[5] (folded) -> ReLU, lane-dense store
            out_ref[...] = jnp.maximum(y, 0.0)                   # (B, hw)
        else:
            # BatchNorm2d (training-mode batch stats, biased variance) + LeakyReLU
            s1 = jnp.sum(y, axis=1, keepdims=True)               # (C*B, 1)
            s2 = jnp.sum(y * y, axis=1, keepdims=True)
            mm = jnp.dot(pm_refs[i][...], jnp.concatenate([s1, s2], axis=1),
                         preferred_element_type=f32)             # cols: mean | E[y^2]
            mean = mm[:, 0:1]
            var = mm[:, 1:2] - mean * mean
            scale = bg_refs[i][...] * lax.rsqrt(var + BN_EPS)
            shift = bb_refs[i][...] - mean * scale
            yn = y * scale + shift
            act = jnp.where(yn > 0, yn, LEAK * yn)               # (C*B, hw)


# ---------------------------------------------------------------------------
# Parameters (deterministic synthetic init; spectral norm baked into weights)
# ---------------------------------------------------------------------------
def _spectral_sigma(w2d, iters=30):
    n = w2d.shape[1]
    v = jnp.ones((n,), jnp.float32) / jnp.sqrt(jnp.float32(n))
    u = w2d @ v
    for _ in range(iters):
        u = w2d @ v
        u = u / (jnp.linalg.norm(u) + 1e-12)
        v = w2d.T @ u
        v = v / (jnp.linalg.norm(v) + 1e-12)
    return jnp.vdot(u, w2d @ v)


def make_params(key, cfg):
    in_dim = cfg['momentums_dim'] + cfg['points_dim']
    emb_dim = cfg['emb_dim']
    C = cfg['num_channels']
    fh, fw = cfg['first_shape']
    ks = cfg['kernel_size']
    keys = iter(jax.random.split(key, 32))

    def lin(out_d, in_d):
        w = 0.2 * jax.random.normal(next(keys), (out_d, in_d), jnp.float32)   # torch (out,in)
        b = 0.1 * jax.random.normal(next(keys), (out_d,), jnp.float32)
        w = w / _spectral_sigma(w)
        return w.T, b.reshape(1, out_d)                                        # (in,out), (1,out)

    def conv(out_c, in_c):
        w = 0.2 * jax.random.normal(next(keys), (out_c, in_c, ks, ks), jnp.float32)
        b = 0.1 * jax.random.normal(next(keys), (out_c,), jnp.float32)
        w = w / _spectral_sigma(w.reshape(out_c, -1))
        return jnp.transpose(w, (2, 3, 1, 0)), b.reshape(1, out_c)             # (KH,KW,Cin,Cout)

    p = {}
    p['emb_w1'], p['emb_b1'] = lin(emb_dim, in_dim)
    p['emb_w2'], p['emb_b2'] = lin(emb_dim, emb_dim)
    p['fc_w'], p['fc_b'] = lin(C[0] * fh * fw, emb_dim)
    chans = [C[0], C[1], C[2], C[3], 1]
    p['conv_w'], p['conv_b'] = [], []
    for i in range(4):
        w, b = conv(chans[i + 1], chans[i])
        p['conv_w'].append(w)
        p['conv_b'].append(b)
    p['bn_g'] = [jnp.ones((1, C[j]), jnp.float32) for j in (1, 2, 3)]
    p['bn_b'] = [jnp.zeros((1, C[j]), jnp.float32) for j in (1, 2, 3)]
    p['c'] = 0.5 + 0.1 * jax.random.normal(next(keys), (6,), jnp.float32)      # consts[i]
    return p


# ---------------------------------------------------------------------------
# Host-side builders (folding, upsample matrices, masks, block conv weights)
# ---------------------------------------------------------------------------
def _nearest_idx(out_size, in_size):
    # PyTorch nn.Upsample(mode='nearest'): src = floor(dst * in / out)
    return (np.arange(out_size) * in_size) // out_size


def _build_upsample_matrix(hin, win, hout, wout):
    """0/1 matrix U with up = act @ U : U[s, p] = 1 iff output pixel p reads input pixel s."""
    sh = _nearest_idx(hout, hin)
    sw = _nearest_idx(wout, win)
    U = np.zeros((hin * win, hout * wout), np.float32)
    for y in range(hout):
        for x in range(wout):
            U[sh[y] * win + sw[x], y * wout + x] = 1.0
    return U


def _build_x_masks(hout, wout, ks):
    """masks[dx, p] = 1 iff column x=(p % wout) shifted by (dx - ks//2) stays inside the image."""
    r = ks // 2
    xs = np.arange(hout * wout) % wout
    m = np.zeros((ks, hout * wout), np.float32)
    for dx in range(ks):
        valid = (xs + dx - r >= 0) & (xs + dx - r < wout)
        m[dx] = valid.astype(np.float32)
    return m


def _build_conv_weight(w_hwio, bias, batch, cscale):
    """Batch-block conv weight W_T (Cout*B, K*K*Cin*B) for channel-major (c*B+b) rows."""
    kh, kw, cin, cout = w_hwio.shape
    w = np.asarray(w_hwio, np.float32) * cscale
    WT = np.zeros((cout * batch, kh * kw * cin * batch), np.float32)
    for dy in range(kh):
        for dx in range(kw):
            t = dy * kw + dx
            for ci in range(cin):
                for co in range(cout):
                    for b in range(batch):
                        WT[co * batch + b, (t * cin + ci) * batch + b] = w[dy, dx, ci, co]
    bb = np.repeat(np.asarray(bias, np.float32).reshape(-1) * cscale, batch).reshape(-1, 1)
    return WT, bb


def _build_pmean(cout, batch, hw):
    """0/1-scaled matrix: (Pmean @ colsum) = per-channel mean broadcast back to (C*B, 1)."""
    P = np.zeros((cout * batch, cout * batch), np.float32)
    inv = 1.0 / float(batch * hw)
    for c in range(cout):
        P[c * batch:(c + 1) * batch, c * batch:(c + 1) * batch] = inv
    return P


def build_kernel_inputs(params, cfg, batch):
    C = cfg['num_channels']
    fh, fw = cfg['first_shape']
    s2 = tuple(cfg['second_shape'])
    last = tuple(cfg['last_shape'])
    ks = cfg['kernel_size']
    assert ks % 2 == 1, "padding='same' path assumes an odd kernel size"
    C0, S0 = C[0], fh * fw
    c = np.asarray(params['c'], np.float32)

    # per conv stage: (input spatial, upsampled/conv spatial)
    sizes = [((fh, fw), s2),
             (s2, (2 * s2[0], 2 * s2[1])),
             ((2 * s2[0], 2 * s2[1]), (4 * s2[0], 4 * s2[1])),
             ((4 * s2[0], 4 * s2[1]), last)]

    # fold consts[0] / consts[1] into the emb / fc weights (exact)
    ew1 = np.asarray(params['emb_w1'], np.float32)
    eb1 = np.asarray(params['emb_b1'], np.float32)
    ew2 = np.asarray(params['emb_w2'], np.float32) * c[0]
    eb2 = np.asarray(params['emb_b2'], np.float32) * c[0]
    fwv = np.asarray(params['fc_w'], np.float32) * c[1]
    fbv = np.asarray(params['fc_b'], np.float32) * c[1]

    umats, masks, wts, cbs, pms = [], [], [], [], []
    for i in range(4):
        (hin, win), (hu, wu) = sizes[i]
        umats.append(_build_upsample_matrix(hin, win, hu, wu))
        masks.append(_build_x_masks(hu, wu, ks))
        w = np.asarray(params['conv_w'][i], np.float32)
        b = np.asarray(params['conv_b'][i], np.float32).reshape(-1)
        WT, bb = _build_conv_weight(w, b, batch, float(c[i + 2]))   # consts[i+2] folded
        wts.append(WT)
        cbs.append(bb)
    for i in range(3):
        (_, (hu, wu)) = sizes[i]
        pms.append(_build_pmean(C[i + 1], batch, hu * wu))

    bngs = [np.repeat(np.asarray(params['bn_g'][i], np.float32).reshape(-1), batch).reshape(-1, 1)
            for i in range(3)]
    bnbs = [np.repeat(np.asarray(params['bn_b'][i], np.float32).reshape(-1), batch).reshape(-1, 1)
            for i in range(3)]

    f32a = functools.partial(jnp.asarray, dtype=jnp.float32)
    bf = functools.partial(jnp.asarray, dtype=jnp.bfloat16)   # exact for 0/1 entries
    weights = (
        f32a(ew1), f32a(eb1), f32a(ew2), f32a(eb2), f32a(fwv), f32a(fbv),
        bf(umats[0]), bf(umats[1]), bf(umats[2]), bf(umats[3]),
        bf(masks[0]), bf(masks[1]), bf(masks[2]), bf(masks[3]),
        bf(wts[0]), f32a(cbs[0]), bf(wts[1]), f32a(cbs[1]),
        bf(wts[2]), f32a(cbs[2]), bf(wts[3]), f32a(cbs[3]),
        f32a(pms[0]), f32a(pms[1]), f32a(pms[2]),
        f32a(bngs[0]), f32a(bnbs[0]), f32a(bngs[1]), f32a(bnbs[1]),
        f32a(bngs[2]), f32a(bnbs[2]),
    )
    meta = dict(
        batch=batch, c0=C0, s0=S0, k=ks,
        stage_hw=tuple(hu * wu for (_, (hu, wu)) in sizes),
        stage_w=tuple(wu for (_, (hu, wu)) in sizes),
        out_hw=last,
    )
    return weights, meta


# ---------------------------------------------------------------------------
# Forward: one pallas_call for the whole network
# ---------------------------------------------------------------------------
def generator_forward(weights, noise, momentum, point, *, meta):
    B = noise.shape[0]
    assert B == meta['batch']
    x_in = jnp.concatenate([momentum, point], axis=1)
    H, W = meta['out_hw']
    kern = functools.partial(
        fused_generator_kernel,
        C0=meta['c0'], S0=meta['s0'], K=meta['k'],
        stage_hw=meta['stage_hw'], stage_w=meta['stage_w'])
    out = pl.pallas_call(
        kern,
        out_shape=jax.ShapeDtypeStruct((B, H * W), jnp.float32),
        in_specs=[VMEM_SPEC] * (2 + len(weights)),
        out_specs=VMEM_SPEC,
        compiler_params=pltpu.CompilerParams(vmem_limit_bytes=32 * 1024 * 1024),
    )(x_in, noise, *weights)
    return out.reshape(B, 1, H, W)


# ---------------------------------------------------------------------------
# Pure-JAX reference (same baked-spectral-norm params) for the correctness check
# ---------------------------------------------------------------------------
def _up_nearest_nchw(x, out_hw):
    _, _, H, W = x.shape
    oh, ow = out_hw
    hi = (jnp.arange(oh) * H) // oh
    wi = (jnp.arange(ow) * W) // ow
    return x[:, :, hi][:, :, :, wi]


def reference_forward(params, noise, momentum, point, cfg):
    hi_prec = jax.lax.Precision.HIGHEST
    dot = functools.partial(jnp.dot, precision=hi_prec)
    c = params['c']
    x = jnp.concatenate([momentum, point], axis=1)
    h = dot(x, params['emb_w1']) + params['emb_b1']
    h = jnp.where(h > 0, h, LEAK * h)
    emb = (dot(h, params['emb_w2']) + params['emb_b2']) * c[0]
    fc = (dot(noise * emb, params['fc_w']) + params['fc_b']) * c[1]
    B = noise.shape[0]
    C = cfg['num_channels']
    fh, fw = cfg['first_shape']
    img = fc.reshape(B, C[0], fh, fw)                       # nn.Unflatten (NCHW)
    img = jnp.where(img > 0, img, LEAK * img)
    img = _up_nearest_nchw(img, cfg['second_shape'])
    for i in range(3):
        img = lax.conv_general_dilated(
            img, params['conv_w'][i], (1, 1), 'SAME',
            dimension_numbers=('NCHW', 'HWIO', 'NCHW'),
            precision=hi_prec) + params['conv_b'][i].reshape(1, -1, 1, 1)
        img = img * c[i + 2]
        mean = jnp.mean(img, axis=(0, 2, 3), keepdims=True)
        var = jnp.mean(jnp.square(img - mean), axis=(0, 2, 3), keepdims=True)
        g = params['bn_g'][i].reshape(1, -1, 1, 1)
        b = params['bn_b'][i].reshape(1, -1, 1, 1)
        img = (img - mean) * lax.rsqrt(var + BN_EPS) * g + b
        img = jnp.where(img > 0, img, LEAK * img)
        tgt = (img.shape[2] * 2, img.shape[3] * 2) if i < 2 else cfg['last_shape']
        img = _up_nearest_nchw(img, tgt)
    img = lax.conv_general_dilated(
        img, params['conv_w'][3], (1, 1), 'SAME',
        dimension_numbers=('NCHW', 'HWIO', 'NCHW'),
        precision=hi_prec) + params['conv_b'][3].reshape(1, -1, 1, 1)
    img = img * c[5]
    return jnp.maximum(img, 0.0)


# ---------------------------------------------------------------------------
if __name__ == "__main__":
    cfg = dict(
        momentums_dim=3,
        points_dim=5,
        emb_dim=32,
        num_channels=[8, 8, 8, 8],
        first_shape=(2, 2),
        second_shape=(4, 4),
        kernel_size=3,
        last_shape=(20, 20),
    )
    key = jax.random.PRNGKey(0)
    pkey, nkey, mkey, ptkey = jax.random.split(key, 4)
    params = make_params(pkey, cfg)

    B = 2
    noise = jax.random.normal(nkey, (B, cfg['emb_dim']), jnp.float32)
    momentum = jax.random.normal(mkey, (B, cfg['momentums_dim']), jnp.float32)
    point = jax.random.normal(ptkey, (B, cfg['points_dim']), jnp.float32)

    weights, meta = build_kernel_inputs(params, cfg, B)

    fwd = jax.jit(functools.partial(generator_forward, meta=meta))
    out = fwd(weights, noise, momentum, point)
    jax.block_until_ready(out)

    assert out.shape == (B, 1, *cfg['last_shape']), out.shape
    assert bool(jnp.all(out >= 0.0))   # final ReLU

    # correctness check against a pure-f32 JAX reference using the same parameters.
    # Tolerance 2e-2 because the kernel intentionally runs the upsample/conv
    # matmuls with bf16 inputs (f32 accumulate) per the performance review.
    ref = reference_forward(params, noise, momentum, point, cfg)
    np.testing.assert_allclose(np.asarray(out), np.asarray(ref), rtol=2e-2, atol=2e-2)

    print("KERNEL_OK")
</pallas_src>

<mosaic_0001>
module attributes {stable_mosaic.version = 11 : i64} {
  func.func @fused_generator_kernel(%arg0: memref<2x8xf32, #tpu.memory_space<vmem>>, %arg1: memref<2x32xf32, #tpu.memory_space<vmem>>, %arg2: memref<8x32xf32, #tpu.memory_space<vmem>>, %arg3: memref<1x32xf32, #tpu.memory_space<vmem>>, %arg4: memref<32x32xf32, #tpu.memory_space<vmem>>, %arg5: memref<1x32xf32, #tpu.memory_space<vmem>>, %arg6: memref<32x32xf32, #tpu.memory_space<vmem>>, %arg7: memref<1x32xf32, #tpu.memory_space<vmem>>, %arg8: memref<4x16xbf16, #tpu.memory_space<vmem>>, %arg9: memref<16x64xbf16, #tpu.memory_space<vmem>>, %arg10: memref<64x256xbf16, #tpu.memory_space<vmem>>, %arg11: memref<256x400xbf16, #tpu.memory_space<vmem>>, %arg12: memref<3x16xbf16, #tpu.memory_space<vmem>>, %arg13: memref<3x64xbf16, #tpu.memory_space<vmem>>, %arg14: memref<3x256xbf16, #tpu.memory_space<vmem>>, %arg15: memref<3x400xbf16, #tpu.memory_space<vmem>>, %arg16: memref<16x144xbf16, #tpu.memory_space<vmem>>, %arg17: memref<16x1xf32, #tpu.memory_space<vmem>>, %arg18: memref<16x144xbf16, #tpu.memory_space<vmem>>, %arg19: memref<16x1xf32, #tpu.memory_space<vmem>>, %arg20: memref<16x144xbf16, #tpu.memory_space<vmem>>, %arg21: memref<16x1xf32, #tpu.memory_space<vmem>>, %arg22: memref<2x144xbf16, #tpu.memory_space<vmem>>, %arg23: memref<2x1xf32, #tpu.memory_space<vmem>>, %arg24: memref<16x16xf32, #tpu.memory_space<vmem>>, %arg25: memref<16x16xf32, #tpu.memory_space<vmem>>, %arg26: memref<16x16xf32, #tpu.memory_space<vmem>>, %arg27: memref<16x1xf32, #tpu.memory_space<vmem>>, %arg28: memref<16x1xf32, #tpu.memory_space<vmem>>, %arg29: memref<16x1xf32, #tpu.memory_space<vmem>>, %arg30: memref<16x1xf32, #tpu.memory_space<vmem>>, %arg31: memref<16x1xf32, #tpu.memory_space<vmem>>, %arg32: memref<16x1xf32, #tpu.memory_space<vmem>>, %arg33: memref<2x400xf32, #tpu.memory_space<vmem>>) attributes {dimension_semantics = [], scalar_prefetch = 0 : i64, scratch_operands = 0 : i64, tpu.core_type = #tpu.core_type<tc>} {
    %c0 = arith.constant 0 : index
    %c0_0 = arith.constant 0 : index
    %0 = vector.load %arg0[%c0, %c0_0] : memref<2x8xf32, #tpu.memory_space<vmem>>, vector<2x8xf32>
    %c0_1 = arith.constant 0 : index
    %c0_2 = arith.constant 0 : index
    %1 = vector.load %arg2[%c0_1, %c0_2] : memref<8x32xf32, #tpu.memory_space<vmem>>, vector<8x32xf32>
    %cst = arith.constant dense<0.000000e+00> : vector<2x32xf32>
    %2 = tpu.matmul %0, %1, %cst {dimension_numbers = #tpu.dot_dimension_numbers<[1], [0], [0], [1], [0, 0, 1, 1], [], []>} : vector<2x8xf32>, vector<8x32xf32>, vector<2x32xf32> -> vector<2x32xf32>
    %c0_3 = arith.constant 0 : index
    %c0_4 = arith.constant 0 : index
    %3 = vector.load %arg3[%c0_3, %c0_4] : memref<1x32xf32, #tpu.memory_space<vmem>>, vector<1x32xf32>
    %4 = vector.broadcast %3 : vector<1x32xf32> to vector<2x32xf32>
    %5 = arith.addf %2, %4 : vector<2x32xf32>
    %cst_5 = arith.constant 0.000000e+00 : f32
    %6 = vector.broadcast %cst_5 : f32 to vector<2x32xf32>
    %7 = arith.cmpf ogt, %5, %6 : vector<2x32xf32>
    %cst_6 = arith.constant 0.00999999977 : f32
    %8 = vector.broadcast %cst_6 : f32 to vector<2x32xf32>
    %9 = arith.mulf %8, %5 : vector<2x32xf32>
    %10 = arith.select %7, %5, %9 : vector<2x32xi1>, vector<2x32xf32>
    %c0_7 = arith.constant 0 : index
    %c0_8 = arith.constant 0 : index
    %11 = vector.load %arg4[%c0_7, %c0_8] : memref<32x32xf32, #tpu.memory_space<vmem>>, vector<32x32xf32>
    %cst_9 = arith.constant dense<0.000000e+00> : vector<2x32xf32>
    %12 = tpu.matmul %10, %11, %cst_9 {dimension_numbers = #tpu.dot_dimension_numbers<[1], [0], [0], [1], [0, 0, 1, 1], [], []>} : vector<2x32xf32>, vector<32x32xf32>, vector<2x32xf32> -> vector<2x32xf32>
    %c0_10 = arith.constant 0 : index
    %c0_11 = arith.constant 0 : index
    %13 = vector.load %arg5[%c0_10, %c0_11] : memref<1x32xf32, #tpu.memory_space<vmem>>, vector<1x32xf32>
    %14 = vector.broadcast %13 : vector<1x32xf32> to vector<2x32xf32>
    %15 = arith.addf %12, %14 : vector<2x32xf32>
    %c0_12 = arith.constant 0 : index
    %c0_13 = arith.constant 0 : index
    %16 = vector.load %arg1[%c0_12, %c0_13] : memref<2x32xf32, #tpu.memory_space<vmem>>, vector<2x32xf32>
    %17 = arith.mulf %16, %15 : vector<2x32xf32>
    %c0_14 = arith.constant 0 : index
    %c0_15 = arith.constant 0 : index
    %18 = vector.load %arg6[%c0_14, %c0_15] : memref<32x32xf32, #tpu.memory_space<vmem>>, vector<32x32xf32>
    %cst_16 = arith.constant dense<0.000000e+00> : vector<2x32xf32>
    %19 = tpu.matmul %17, %18, %cst_16 {dimension_numbers = #tpu.dot_dimension_numbers<[1], [0], [0], [1], [0, 0, 1, 1], [], []>} : vector<2x32xf32>, vector<32x32xf32>, vector<2x32xf32> -> vector<2x32xf32>
    %c0_17 = arith.constant 0 : index
    %c0_18 = arith.constant 0 : index
    %20 = vector.load %arg7[%c0_17, %c0_18] : memref<1x32xf32, #tpu.memory_space<vmem>>, vector<1x32xf32>
    %21 = vector.broadcast %20 : vector<1x32xf32> to vector<2x32xf32>
    %22 = arith.addf %19, %21 : vector<2x32xf32>
    %cst_19 = arith.constant 0.000000e+00 : f32
    %23 = vector.broadcast %cst_19 : f32 to vector<2x32xf32>
    %24 = arith.cmpf ogt, %22, %23 : vector<2x32xf32>
    %cst_20 = arith.constant 0.00999999977 : f32
    %25 = vector.broadcast %cst_20 : f32 to vector<2x32xf32>
    %26 = arith.mulf %25, %22 : vector<2x32xf32>
    %27 = arith.select %24, %22, %26 : vector<2x32xi1>, vector<2x32xf32>
    %28 = vector.extract_strided_slice %27 {offsets = [0, 0], sizes = [2, 4], strides = [1, 1]} : vector<2x32xf32> to vector<2x4xf32>
    %29 = vector.extract_strided_slice %27 {offsets = [0, 4], sizes = [2, 4], strides = [1, 1]} : vector<2x32xf32> to vector<2x4xf32>
    %30 = vector.extract_strided_slice %27 {offsets = [0, 8], sizes = [2, 4], strides = [1, 1]} : vector<2x32xf32> to vector<2x4xf32>
    %31 = vector.extract_strided_slice %27 {offsets = [0, 12], sizes = [2, 4], strides = [1, 1]} : vector<2x32xf32> to vector<2x4xf32>
    %32 = vector.extract_strided_slice %27 {offsets = [0, 16], sizes = [2, 4], strides = [1, 1]} : vector<2x32xf32> to vector<2x4xf32>
    %33 = vector.extract_strided_slice %27 {offsets = [0, 20], sizes = [2, 4], strides = [1, 1]} : vector<2x32xf32> to vector<2x4xf32>
    %34 = vector.extract_strided_slice %27 {offsets = [0, 24], sizes = [2, 4], strides = [1, 1]} : vector<2x32xf32> to vector<2x4xf32>
    %35 = vector.extract_strided_slice %27 {offsets = [0, 28], sizes = [2, 4], strides = [1, 1]} : vector<2x32xf32> to vector<2x4xf32>
    %36 = tpu.concatenate %28, %29, %30, %31, %32, %33, %34, %35 in 0 : vector<2x4xf32>, vector<2x4xf32>, vector<2x4xf32>, vector<2x4xf32>, vector<2x4xf32>, vector<2x4xf32>, vector<2x4xf32>, vector<2x4xf32> -> vector<16x4xf32>
    %37 = arith.truncf %36 : vector<16x4xf32> to vector<16x4xbf16>
    %c0_21 = arith.constant 0 : index
    %c0_22 = arith.constant 0 : index
    %38 = vector.load %arg8[%c0_21, %c0_22] : memref<4x16xbf16, #tpu.memory_space<vmem>>, vector<4x16xbf16>
    %cst_23 = arith.constant dense<0.000000e+00> : vector<16x16xf32>
    %39 = tpu.matmul %37, %38, %cst_23 {dimension_numbers = #tpu.dot_dimension_numbers<[1], [0], [0], [1], [0, 0, 1, 1], [], []>} : vector<16x4xbf16>, vector<4x16xbf16>, vector<16x16xf32> -> vector<16x16xf32>
    %40 = arith.truncf %39 : vector<16x16xf32> to vector<16x16xbf16>
    %cst_24 = arith.constant 0.000000e+00 : bf16
    %41 = vector.broadcast %cst_24 : bf16 to vector<16x5xbf16>
    %42 = vector.extract_strided_slice %40 {offsets = [0, 0], sizes = [16, 11], strides = [1, 1]} : vector<16x16xbf16> to vector<16x11xbf16>
    %43 = tpu.concatenate %41, %42 in 1 : vector<16x5xbf16>, vector<16x11xbf16> -> vector<16x16xbf16>
    %c0_25 = arith.constant 0 : index
    %c0_26 = arith.constant 0 : index
    %44 = vector.load %arg12[%c0_25, %c0_26] : memref<3x16xbf16, #tpu.memory_space<vmem>>, vector<1x16xbf16>
    %45 = vector.broadcast %44 : vector<1x16xbf16> to vector<16x16xbf16>
    %46 = arith.mulf %43, %45 : vector<16x16xbf16>
    %cst_27 = arith.constant 0.000000e+00 : bf16
    %47 = vector.broadcast %cst_27 : bf16 to vector<16x4xbf16>
    %48 = vector.extract_strided_slice %40 {offsets = [0, 0], sizes = [16, 12], strides = [1, 1]} : vector<16x16xbf16> to vector<16x12xbf16>
    %49 = tpu.concatenate %47, %48 in 1 : vector<16x4xbf16>, vector<16x12xbf16> -> vector<16x16xbf16>
    %cst_28 = arith.constant 0.000000e+00 : bf16
    %50 = vector.broadcast %cst_28 : bf16 to vector<16x3xbf16>
    %51 = vector.extract_strided_slice %40 {offsets = [0, 0], sizes = [16, 13], strides = [1, 1]} : vector<16x16xbf16> to vector<16x13xbf16>
    %52 = tpu.concatenate %50, %51 in 1 : vector<16x3xbf16>, vector<16x13xbf16> -> vector<16x16xbf16>
    %c2 = arith.constant 2 : index
    %c0_29 = arith.constant 0 : index
    %53 = vector.load %arg12[%c2, %c0_29] : memref<3x16xbf16, #tpu.memory_space<vmem>>, vector<1x16xbf16>
    %54 = vector.broadcast %53 : vector<1x16xbf16> to vector<16x16xbf16>
    %55 = arith.mulf %52, %54 : vector<16x16xbf16>
    %cst_30 = arith.constant 0.000000e+00 : bf16
    %56 = vector.broadcast %cst_30 : bf16 to vector<16x1xbf16>
    %57 = vector.extract_strided_slice %40 {offsets = [0, 0], sizes = [16, 15], strides = [1, 1]} : vector<16x16xbf16> to vector<16x15xbf16>
    %58 = tpu.concatenate %56, %57 in 1 : vector<16x1xbf16>, vector<16x15xbf16> -> vector<16x16xbf16>
    %c0_31 = arith.constant 0 : index
    %c0_32 = arith.constant 0 : index
    %59 = vector.load %arg12[%c0_31, %c0_32] : memref<3x16xbf16, #tpu.memory_space<vmem>>, vector<1x16xbf16>
    %60 = vector.broadcast %59 : vector<1x16xbf16> to vector<16x16xbf16>
    %61 = arith.mulf %58, %60 : vector<16x16xbf16>
    %cst_33 = arith.constant 0.000000e+00 : bf16
    %62 = vector.broadcast %cst_33 : bf16 to vector<16x1xbf16>
    %63 = vector.extract_strided_slice %40 {offsets = [0, 1], sizes = [16, 15], strides = [1, 1]} : vector<16x16xbf16> to vector<16x15xbf16>
    %64 = tpu.concatenate %63, %62 in 1 : vector<16x15xbf16>, vector<16x1xbf16> -> vector<16x16xbf16>
    %c2_34 = arith.constant 2 : index
    %c0_35 = arith.constant 0 : index
    %65 = vector.load %arg12[%c2_34, %c0_35] : memref<3x16xbf16, #tpu.memory_space<vmem>>, vector<1x16xbf16>
    %66 = vector.broadcast %65 : vector<1x16xbf16> to vector<16x16xbf16>
    %67 = arith.mulf %64, %66 : vector<16x16xbf16>
    %cst_36 = arith.constant 0.000000e+00 : bf16
    %68 = vector.broadcast %cst_36 : bf16 to vector<16x3xbf16>
    %69 = vector.extract_strided_slice %40 {offsets = [0, 3], sizes = [16, 13], strides = [1, 1]} : vector<16x16xbf16> to vector<16x13xbf16>
    %70 = tpu.concatenate %69, %68 in 1 : vector<16x13xbf16>, vector<16x3xbf16> -> vector<16x16xbf16>
    %c0_37 = arith.constant 0 : index
    %c0_38 = arith.constant 0 : index
    %71 = vector.load %arg12[%c0_37, %c0_38] : memref<3x16xbf16, #tpu.memory_space<vmem>>, vector<1x16xbf16>
    %72 = vector.broadcast %71 : vector<1x16xbf16> to vector<16x16xbf16>
    %73 = arith.mulf %70, %72 : vector<16x16xbf16>
    %cst_39 = arith.constant 0.000000e+00 : bf16
    %74 = vector.broadcast %cst_39 : bf16 to vector<16x4xbf16>
    %75 = vector.extract_strided_slice %40 {offsets = [0, 4], sizes = [16, 12], strides = [1, 1]} : vector<16x16xbf16> to vector<16x12xbf16>
    %76 = tpu.concatenate %75, %74 in 1 : vector<16x12xbf16>, vector<16x4xbf16> -> vector<16x16xbf16>
    %cst_40 = arith.constant 0.000000e+00 : bf16
    %77 = vector.broadcast %cst_40 : bf16 to vector<16x5xbf16>
    %78 = vector.extract_strided_slice %40 {offsets = [0, 5], sizes = [16, 11], strides = [1, 1]} : vector<16x16xbf16> to vector<16x11xbf16>
    %79 = tpu.concatenate %78, %77 in 1 : vector<16x11xbf16>, vector<16x5xbf16> -> vector<16x16xbf16>
    %c2_41 = arith.constant 2 : index
    %c0_42 = arith.constant 0 : index
    %80 = vector.load %arg12[%c2_41, %c0_42] : memref<3x16xbf16, #tpu.memory_space<vmem>>, vector<1x16xbf16>
    %81 = vector.broadcast %80 : vector<1x16xbf16> to vector<16x16xbf16>
    %82 = arith.mulf %79, %81 : vector<16x16xbf16>
    %83 = tpu.concatenate %46, %49, %55, %61, %40, %67, %73, %76, %82 in 0 : vector<16x16xbf16>, vector<16x16xbf16>, vector<16x16xbf16>, vector<16x16xbf16>, vector<16x16xbf16>, vector<16x16xbf16>, vector<16x16xbf16>, vector<16x16xbf16>, vector<16x16xbf16> -> vector<144x16xbf16>
    %c0_43 = arith.constant 0 : index
    %c0_44 = arith.constant 0 : index
    %84 = vector.load %arg16[%c0_43, %c0_44] : memref<16x144xbf16, #tpu.memory_space<vmem>>, vector<16x144xbf16>
    %cst_45 = arith.constant dense<0.000000e+00> : vector<16x16xf32>
    %85 = tpu.matmul %84, %83, %cst_45 {dimension_numbers = #tpu.dot_dimension_numbers<[1], [0], [0], [1], [0, 0, 1, 1], [], []>} : vector<16x144xbf16>, vector<144x16xbf16>, vector<16x16xf32> -> vector<16x16xf32>
    %c0_46 = arith.constant 0 : index
    %c0_47 = arith.constant 0 : index
    %86 = vector.load %arg17[%c0_46, %c0_47] : memref<16x1xf32, #tpu.memory_space<vmem>>, vector<16x1xf32>
    %87 = vector.broadcast %86 : vector<16x1xf32> to vector<16x16xf32>
    %88 = arith.addf %85, %87 : vector<16x16xf32>
    %cst_48 = arith.constant dense<0.000000e+00> : vector<16xf32>
    %89 = vector.multi_reduction <add>, %88, %cst_48 [1] : vector<16x16xf32> to vector<16xf32>
    %90 = vector.shape_cast %89 : vector<16xf32> to vector<16x1xf32>
    %91 = arith.mulf %88, %88 : vector<16x16xf32>
    %cst_49 = arith.constant dense<0.000000e+00> : vector<16xf32>
    %92 = vector.multi_reduction <add>, %91, %cst_49 [1] : vector<16x16xf32> to vector<16xf32>
    %93 = vector.shape_cast %92 : vector<16xf32> to vector<16x1xf32>
    %c0_50 = arith.constant 0 : index
    %c0_51 = arith.constant 0 : index
    %94 = vector.load %arg24[%c0_50, %c0_51] : memref<16x16xf32, #tpu.memory_space<vmem>>, vector<16x16xf32>
    %95 = tpu.concatenate %90, %93 in 1 : vector<16x1xf32>, vector<16x1xf32> -> vector<16x2xf32>
    %cst_52 = arith.constant dense<0.000000e+00> : vector<16x2xf32>
    %96 = tpu.matmul %94, %95, %cst_52 {dimension_numbers = #tpu.dot_dimension_numbers<[1], [0], [0], [1], [0, 0, 1, 1], [], []>} : vector<16x16xf32>, vector<16x2xf32>, vector<16x2xf32> -> vector<16x2xf32>
    %97 = vector.extract_strided_slice %96 {offsets = [0, 0], sizes = [16, 1], strides = [1, 1]} : vector<16x2xf32> to vector<16x1xf32>
    %98 = vector.extract_strided_slice %96 {offsets = [0, 1], sizes = [16, 1], strides = [1, 1]} : vector<16x2xf32> to vector<16x1xf32>
    %99 = arith.mulf %97, %97 : vector<16x1xf32>
    %100 = arith.subf %98, %99 : vector<16x1xf32>
    %c0_53 = arith.constant 0 : index
    %c0_54 = arith.constant 0 : index
    %101 = vector.load %arg27[%c0_53, %c0_54] : memref<16x1xf32, #tpu.memory_space<vmem>>, vector<16x1xf32>
    %cst_55 = arith.constant 9.99999974E-6 : f32
    %102 = vector.broadcast %cst_55 : f32 to vector<16x1xf32>
    %103 = arith.addf %100, %102 : vector<16x1xf32>
    %104 = math.rsqrt %103 : vector<16x1xf32>
    %105 = arith.mulf %101, %104 : vector<16x1xf32>
    %c0_56 = arith.constant 0 : index
    %c0_57 = arith.constant 0 : index
    %106 = vector.load %arg28[%c0_56, %c0_57] : memref<16x1xf32, #tpu.memory_space<vmem>>, vector<16x1xf32>
    %107 = arith.mulf %97, %105 : vector<16x1xf32>
    %108 = arith.subf %106, %107 : vector<16x1xf32>
    %109 = vector.broadcast %105 : vector<16x1xf32> to vector<16x16xf32>
    %110 = arith.mulf %88, %109 : vector<16x16xf32>
    %111 = vector.broadcast %108 : vector<16x1xf32> to vector<16x16xf32>
    %112 = arith.addf %110, %111 : vector<16x16xf32>
    %cst_58 = arith.constant 0.000000e+00 : f32
    %113 = vector.broadcast %cst_58 : f32 to vector<16x16xf32>
    %114 = arith.cmpf ogt, %112, %113 : vector<16x16xf32>
    %cst_59 = arith.constant 0.00999999977 : f32
    %115 = vector.broadcast %cst_59 : f32 to vector<16x16xf32>
    %116 = arith.mulf %115, %112 : vector<16x16xf32>
    %117 = arith.select %114, %112, %116 : vector<16x16xi1>, vector<16x16xf32>
    %118 = arith.truncf %117 : vector<16x16xf32> to vector<16x16xbf16>
    %c0_60 = arith.constant 0 : index
    %c0_61 = arith.constant 0 : index
    %119 = vector.load %arg9[%c0_60, %c0_61] : memref<16x64xbf16, #tpu.memory_space<vmem>>, vector<16x64xbf16>
    %cst_62 = arith.constant dense<0.000000e+00> : vector<16x64xf32>
    %120 = tpu.matmul %118, %119, %cst_62 {dimension_numbers = #tpu.dot_dimension_numbers<[1], [0], [0], [1], [0, 0, 1, 1], [], []>} : vector<16x16xbf16>, vector<16x64xbf16>, vector<16x64xf32> -> vector<16x64xf32>
    %121 = arith.truncf %120 : vector<16x64xf32> to vector<16x64xbf16>
    %cst_63 = arith.constant 0.000000e+00 : bf16
    %122 = vector.broadcast %cst_63 : bf16 to vector<16x9xbf16>
    %123 = vector.extract_strided_slice %121 {offsets = [0, 0], sizes = [16, 55], strides = [1, 1]} : vector<16x64xbf16> to vector<16x55xbf16>
    %124 = tpu.concatenate %122, %123 in 1 : vector<16x9xbf16>, vector<16x55xbf16> -> vector<16x64xbf16>
    %c0_64 = arith.constant 0 : index
    %c0_65 = arith.constant 0 : index
    %125 = vector.load %arg13[%c0_64, %c0_65] : memref<3x64xbf16, #tpu.memory_space<vmem>>, vector<1x64xbf16>
    %126 = vector.broadcast %125 : vector<1x64xbf16> to vector<16x64xbf16>
    %127 = arith.mulf %124, %126 : vector<16x64xbf16>
    %cst_66 = arith.constant 0.000000e+00 : bf16
    %128 = vector.broadcast %cst_66 : bf16 to vector<16x8xbf16>
    %129 = vector.extract_strided_slice %121 {offsets = [0, 0], sizes = [16, 56], strides = [1, 1]} : vector<16x64xbf16> to vector<16x56xbf16>
    %130 = tpu.concatenate %128, %129 in 1 : vector<16x8xbf16>, vector<16x56xbf16> -> vector<16x64xbf16>
    %cst_67 = arith.constant 0.000000e+00 : bf16
    %131 = vector.broadcast %cst_67 : bf16 to vector<16x7xbf16>
    %132 = vector.extract_strided_slice %121 {offsets = [0, 0], sizes = [16, 57], strides = [1, 1]} : vector<16x64xbf16> to vector<16x57xbf16>
    %133 = tpu.concatenate %131, %132 in 1 : vector<16x7xbf16>, vector<16x57xbf16> -> vector<16x64xbf16>
    %c2_68 = arith.constant 2 : index
    %c0_69 = arith.constant 0 : index
    %134 = vector.load %arg13[%c2_68, %c0_69] : memref<3x64xbf16, #tpu.memory_space<vmem>>, vector<1x64xbf16>
    %135 = vector.broadcast %134 : vector<1x64xbf16> to vector<16x64xbf16>
    %136 = arith.mulf %133, %135 : vector<16x64xbf16>
    %cst_70 = arith.constant 0.000000e+00 : bf16
    %137 = vector.broadcast %cst_70 : bf16 to vector<16x1xbf16>
    %138 = vector.extract_strided_slice %121 {offsets = [0, 0], sizes = [16, 63], strides = [1, 1]} : vector<16x64xbf16> to vector<16x63xbf16>
    %139 = tpu.concatenate %137, %138 in 1 : vector<16x1xbf16>, vector<16x63xbf16> -> vector<16x64xbf16>
    %c0_71 = arith.constant 0 : index
    %c0_72 = arith.constant 0 : index
    %140 = vector.load %arg13[%c0_71, %c0_72] : memref<3x64xbf16, #tpu.memory_space<vmem>>, vector<1x64xbf16>
    %141 = vector.broadcast %140 : vector<1x64xbf16> to vector<16x64xbf16>
    %142 = arith.mulf %139, %141 : vector<16x64xbf16>
    %cst_73 = arith.constant 0.000000e+00 : bf16
    %143 = vector.broadcast %cst_73 : bf16 to vector<16x1xbf16>
    %144 = vector.extract_strided_slice %121 {offsets = [0, 1], sizes = [16, 63], strides = [1, 1]} : vector<16x64xbf16> to vector<16x63xbf16>
    %145 = tpu.concatenate %144, %143 in 1 : vector<16x63xbf16>, vector<16x1xbf16> -> vector<16x64xbf16>
    %c2_74 = arith.constant 2 : index
    %c0_75 = arith.constant 0 : index
    %146 = vector.load %arg13[%c2_74, %c0_75] : memref<3x64xbf16, #tpu.memory_space<vmem>>, vector<1x64xbf16>
    %147 = vector.broadcast %146 : vector<1x64xbf16> to vector<16x64xbf16>
    %148 = arith.mulf %145, %147 : vector<16x64xbf16>
    %cst_76 = arith.constant 0.000000e+00 : bf16
    %149 = vector.broadcast %cst_76 : bf16 to vector<16x7xbf16>
    %150 = vector.extract_strided_slice %121 {offsets = [0, 7], sizes = [16, 57], strides = [1, 1]} : vector<16x64xbf16> to vector<16x57xbf16>
    %151 = tpu.concatenate %150, %149 in 1 : vector<16x57xbf16>, vector<16x7xbf16> -> vector<16x64xbf16>
    %c0_77 = arith.constant 0 : index
    %c0_78 = arith.constant 0 : index
    %152 = vector.load %arg13[%c0_77, %c0_78] : memref<3x64xbf16, #tpu.memory_space<vmem>>, vector<1x64xbf16>
    %153 = vector.broadcast %152 : vector<1x64xbf16> to vector<16x64xbf16>
    %154 = arith.mulf %151, %153 : vector<16x64xbf16>
    %cst_79 = arith.constant 0.000000e+00 : bf16
    %155 = vector.broadcast %cst_79 : bf16 to vector<16x8xbf16>
    %156 = vector.extract_strided_slice %121 {offsets = [0, 8], sizes = [16, 56], strides = [1, 1]} : vector<16x64xbf16> to vector<16x56xbf16>
    %157 = tpu.concatenate %156, %155 in 1 : vector<16x56xbf16>, vector<16x8xbf16> -> vector<16x64xbf16>
    %cst_80 = arith.constant 0.000000e+00 : bf16
    %158 = vector.broadcast %cst_80 : bf16 to vector<16x9xbf16>
    %159 = vector.extract_strided_slice %121 {offsets = [0, 9], sizes = [16, 55], strides = [1, 1]} : vector<16x64xbf16> to vector<16x55xbf16>
    %160 = tpu.concatenate %159, %158 in 1 : vector<16x55xbf16>, vector<16x9xbf16> -> vector<16x64xbf16>
    %c2_81 = arith.constant 2 : index
    %c0_82 = arith.constant 0 : index
    %161 = vector.load %arg13[%c2_81, %c0_82] : memref<3x64xbf16, #tpu.memory_space<vmem>>, vector<1x64xbf16>
    %162 = vector.broadcast %161 : vector<1x64xbf16> to vector<16x64xbf16>
    %163 = arith.mulf %160, %162 : vector<16x64xbf16>
    %164 = tpu.concatenate %127, %130, %136, %142, %121, %148, %154, %157, %163 in 0 : vector<16x64xbf16>, vector<16x64xbf16>, vector<16x64xbf16>, vector<16x64xbf16>, vector<16x64xbf16>, vector<16x64xbf16>, vector<16x64xbf16>, vector<16x64xbf16>, vector<16x64xbf16> -> vector<144x64xbf16>
    %c0_83 = arith.constant 0 : index
    %c0_84 = arith.constant 0 : index
    %165 = vector.load %arg18[%c0_83, %c0_84] : memref<16x144xbf16, #tpu.memory_space<vmem>>, vector<16x144xbf16>
    %cst_85 = arith.constant dense<0.000000e+00> : vector<16x64xf32>
    %166 = tpu.matmul %165, %164, %cst_85 {dimension_numbers = #tpu.dot_dimension_numbers<[1], [0], [0], [1], [0, 0, 1, 1], [], []>} : vector<16x144xbf16>, vector<144x64xbf16>, vector<16x64xf32> -> vector<16x64xf32>
    %c0_86 = arith.constant 0 : index
    %c0_87 = arith.constant 0 : index
    %167 = vector.load %arg19[%c0_86, %c0_87] : memref<16x1xf32, #tpu.memory_space<vmem>>, vector<16x1xf32>
    %168 = vector.broadcast %167 : vector<16x1xf32> to vector<16x64xf32>
    %169 = arith.addf %166, %168 : vector<16x64xf32>
    %cst_88 = arith.constant dense<0.000000e+00> : vector<16xf32>
    %170 = vector.multi_reduction <add>, %169, %cst_88 [1] : vector<16x64xf32> to vector<16xf32>
    %171 = vector.shape_cast %170 : vector<16xf32> to vector<16x1xf32>
    %172 = arith.mulf %169, %169 : vector<16x64xf32>
    %cst_89 = arith.constant dense<0.000000e+00> : vector<16xf32>
    %173 = vector.multi_reduction <add>, %172, %cst_89 [1] : vector<16x64xf32> to vector<16xf32>
    %174 = vector.shape_cast %173 : vector<16xf32> to vector<16x1xf32>
    %c0_90 = arith.constant 0 : index
    %c0_91 = arith.constant 0 : index
    %175 = vector.load %arg25[%c0_90, %c0_91] : memref<16x16xf32, #tpu.memory_space<vmem>>, vector<16x16xf32>
    %176 = tpu.concatenate %171, %174 in 1 : vector<16x1xf32>, vector<16x1xf32> -> vector<16x2xf32>
    %cst_92 = arith.constant dense<0.000000e+00> : vector<16x2xf32>
    %177 = tpu.matmul %175, %176, %cst_92 {dimension_numbers = #tpu.dot_dimension_numbers<[1], [0], [0], [1], [0, 0, 1, 1], [], []>} : vector<16x16xf32>, vector<16x2xf32>, vector<16x2xf32> -> vector<16x2xf32>
    %178 = vector.extract_strided_slice %177 {offsets = [0, 0], sizes = [16, 1], strides = [1, 1]} : vector<16x2xf32> to vector<16x1xf32>
    %179 = vector.extract_strided_slice %177 {offsets = [0, 1], sizes = [16, 1], strides = [1, 1]} : vector<16x2xf32> to vector<16x1xf32>
    %180 = arith.mulf %178, %178 : vector<16x1xf32>
    %181 = arith.subf %179, %180 : vector<16x1xf32>
    %c0_93 = arith.constant 0 : index
    %c0_94 = arith.constant 0 : index
    %182 = vector.load %arg29[%c0_93, %c0_94] : memref<16x1xf32, #tpu.memory_space<vmem>>, vector<16x1xf32>
    %cst_95 = arith.constant 9.99999974E-6 : f32
    %183 = vector.broadcast %cst_95 : f32 to vector<16x1xf32>
    %184 = arith.addf %181, %183 : vector<16x1xf32>
    %185 = math.rsqrt %184 : vector<16x1xf32>
    %186 = arith.mulf %182, %185 : vector<16x1xf32>
    %c0_96 = arith.constant 0 : index
    %c0_97 = arith.constant 0 : index
    %187 = vector.load %arg30[%c0_96, %c0_97] : memref<16x1xf32, #tpu.memory_space<vmem>>, vector<16x1xf32>
    %188 = arith.mulf %178, %186 : vector<16x1xf32>
    %189 = arith.subf %187, %188 : vector<16x1xf32>
    %190 = vector.broadcast %186 : vector<16x1xf32> to vector<16x64xf32>
    %191 = arith.mulf %169, %190 : vector<16x64xf32>
    %192 = vector.broadcast %189 : vector<16x1xf32> to vector<16x64xf32>
    %193 = arith.addf %191, %192 : vector<16x64xf32>
    %cst_98 = arith.constant 0.000000e+00 : f32
    %194 = vector.broadcast %cst_98 : f32 to vector<16x64xf32>
    %195 = arith.cmpf ogt, %193, %194 : vector<16x64xf32>
    %cst_99 = arith.constant 0.00999999977 : f32
    %196 = vector.broadcast %cst_99 : f32 to vector<16x64xf32>
    %197 = arith.mulf %196, %193 : vector<16x64xf32>
    %198 = arith.select %195, %193, %197 : vector<16x64xi1>, vector<16x64xf32>
    %199 = arith.truncf %198 : vector<16x64xf32> to vector<16x64xbf16>
    %c0_100 = arith.constant 0 : index
    %c0_101 = arith.constant 0 : index
    %200 = vector.load %arg10[%c0_100, %c0_101] : memref<64x256xbf16, #tpu.memory_space<vmem>>, vector<64x256xbf16>
    %cst_102 = arith.constant dense<0.000000e+00> : vector<16x256xf32>
    %201 = tpu.matmul %199, %200, %cst_102 {dimension_numbers = #tpu.dot_dimension_numbers<[1], [0], [0], [1], [0, 0, 1, 1], [], []>} : vector<16x64xbf16>, vector<64x256xbf16>, vector<16x256xf32> -> vector<16x256xf32>
    %202 = arith.truncf %201 : vector<16x256xf32> to vector<16x256xbf16>
    %cst_103 = arith.constant 0.000000e+00 : bf16
    %203 = vector.broadcast %cst_103 : bf16 to vector<16x17xbf16>
    %204 = vector.extract_strided_slice %202 {offsets = [0, 0], sizes = [16, 239], strides = [1, 1]} : vector<16x256xbf16> to vector<16x239xbf16>
    %205 = tpu.concatenate %203, %204 in 1 : vector<16x17xbf16>, vector<16x239xbf16> -> vector<16x256xbf16>
    %c0_104 = arith.constant 0 : index
    %c0_105 = arith.constant 0 : index
    %206 = vector.load %arg14[%c0_104, %c0_105] : memref<3x256xbf16, #tpu.memory_space<vmem>>, vector<1x256xbf16>
    %207 = vector.broadcast %206 : vector<1x256xbf16> to vector<16x256xbf16>
    %208 = arith.mulf %205, %207 : vector<16x256xbf16>
    %cst_106 = arith.constant 0.000000e+00 : bf16
    %209 = vector.broadcast %cst_106 : bf16 to vector<16x16xbf16>
    %210 = vector.extract_strided_slice %202 {offsets = [0, 0], sizes = [16, 240], strides = [1, 1]} : vector<16x256xbf16> to vector<16x240xbf16>
    %211 = tpu.concatenate %209, %210 in 1 : vector<16x16xbf16>, vector<16x240xbf16> -> vector<16x256xbf16>
    %cst_107 = arith.constant 0.000000e+00 : bf16
    %212 = vector.broadcast %cst_107 : bf16 to vector<16x15xbf16>
    %213 = vector.extract_strided_slice %202 {offsets = [0, 0], sizes = [16, 241], strides = [1, 1]} : vector<16x256xbf16> to vector<16x241xbf16>
    %214 = tpu.concatenate %212, %213 in 1 : vector<16x15xbf16>, vector<16x241xbf16> -> vector<16x256xbf16>
    %c2_108 = arith.constant 2 : index
    %c0_109 = arith.constant 0 : index
    %215 = vector.load %arg14[%c2_108, %c0_109] : memref<3x256xbf16, #tpu.memory_space<vmem>>, vector<1x256xbf16>
    %216 = vector.broadcast %215 : vector<1x256xbf16> to vector<16x256xbf16>
    %217 = arith.mulf %214, %216 : vector<16x256xbf16>
    %cst_110 = arith.constant 0.000000e+00 : bf16
    %218 = vector.broadcast %cst_110 : bf16 to vector<16x1xbf16>
    %219 = vector.extract_strided_slice %202 {offsets = [0, 0], sizes = [16, 255], strides = [1, 1]} : vector<16x256xbf16> to vector<16x255xbf16>
    %220 = tpu.concatenate %218, %219 in 1 : vector<16x1xbf16>, vector<16x255xbf16> -> vector<16x256xbf16>
    %c0_111 = arith.constant 0 : index
    %c0_112 = arith.constant 0 : index
    %221 = vector.load %arg14[%c0_111, %c0_112] : memref<3x256xbf16, #tpu.memory_space<vmem>>, vector<1x256xbf16>
    %222 = vector.broadcast %221 : vector<1x256xbf16> to vector<16x256xbf16>
    %223 = arith.mulf %220, %222 : vector<16x256xbf16>
    %cst_113 = arith.constant 0.000000e+00 : bf16
    %224 = vector.broadcast %cst_113 : bf16 to vector<16x1xbf16>
    %225 = vector.extract_strided_slice %202 {offsets = [0, 1], sizes = [16, 255], strides = [1, 1]} : vector<16x256xbf16> to vector<16x255xbf16>
    %226 = tpu.concatenate %225, %224 in 1 : vector<16x255xbf16>, vector<16x1xbf16> -> vector<16x256xbf16>
    %c2_114 = arith.constant 2 : index
    %c0_115 = arith.constant 0 : index
    %227 = vector.load %arg14[%c2_114, %c0_115] : memref<3x256xbf16, #tpu.memory_space<vmem>>, vector<1x256xbf16>
    %228 = vector.broadcast %227 : vector<1x256xbf16> to vector<16x256xbf16>
    %229 = arith.mulf %226, %228 : vector<16x256xbf16>
    %cst_116 = arith.constant 0.000000e+00 : bf16
    %230 = vector.broadcast %cst_116 : bf16 to vector<16x15xbf16>
    %231 = vector.extract_strided_slice %202 {offsets = [0, 15], sizes = [16, 241], strides = [1, 1]} : vector<16x256xbf16> to vector<16x241xbf16>
    %232 = tpu.concatenate %231, %230 in 1 : vector<16x241xbf16>, vector<16x15xbf16> -> vector<16x256xbf16>
    %c0_117 = arith.constant 0 : index
    %c0_118 = arith.constant 0 : index
    %233 = vector.load %arg14[%c0_117, %c0_118] : memref<3x256xbf16, #tpu.memory_space<vmem>>, vector<1x256xbf16>
    %234 = vector.broadcast %233 : vector<1x256xbf16> to vector<16x256xbf16>
    %235 = arith.mulf %232, %234 : vector<16x256xbf16>
    %cst_119 = arith.constant 0.000000e+00 : bf16
    %236 = vector.broadcast %cst_119 : bf16 to vector<16x16xbf16>
    %237 = vector.extract_strided_slice %202 {offsets = [0, 16], sizes = [16, 240], strides = [1, 1]} : vector<16x256xbf16> to vector<16x240xbf16>
    %238 = tpu.concatenate %237, %236 in 1 : vector<16x240xbf16>, vector<16x16xbf16> -> vector<16x256xbf16>
    %cst_120 = arith.constant 0.000000e+00 : bf16
    %239 = vector.broadcast %cst_120 : bf16 to vector<16x17xbf16>
    %240 = vector.extract_strided_slice %202 {offsets = [0, 17], sizes = [16, 239], strides = [1, 1]} : vector<16x256xbf16> to vector<16x239xbf16>
    %241 = tpu.concatenate %240, %239 in 1 : vector<16x239xbf16>, vector<16x17xbf16> -> vector<16x256xbf16>
    %c2_121 = arith.constant 2 : index
    %c0_122 = arith.constant 0 : index
    %242 = vector.load %arg14[%c2_121, %c0_122] : memref<3x256xbf16, #tpu.memory_space<vmem>>, vector<1x256xbf16>
    %243 = vector.broadcast %242 : vector<1x256xbf16> to vector<16x256xbf16>
    %244 = arith.mulf %241, %243 : vector<16x256xbf16>
    %245 = tpu.concatenate %208, %211, %217, %223, %202, %229, %235, %238, %244 in 0 : vector<16x256xbf16>, vector<16x256xbf16>, vector<16x256xbf16>, vector<16x256xbf16>, vector<16x256xbf16>, vector<16x256xbf16>, vector<16x256xbf16>, vector<16x256xbf16>, vector<16x256xbf16> -> vector<144x256xbf16>
    %c0_123 = arith.constant 0 : index
    %c0_124 = arith.constant 0 : index
    %246 = vector.load %arg20[%c0_123, %c0_124] : memref<16x144xbf16, #tpu.memory_space<vmem>>, vector<16x144xbf16>
    %cst_125 = arith.constant dense<0.000000e+00> : vector<16x256xf32>
    %247 = tpu.matmul %246, %245, %cst_125 {dimension_numbers = #tpu.dot_dimension_numbers<[1], [0], [0], [1], [0, 0, 1, 1], [], []>} : vector<16x144xbf16>, vector<144x256xbf16>, vector<16x256xf32> -> vector<16x256xf32>
    %c0_126 = arith.constant 0 : index
    %c0_127 = arith.constant 0 : index
    %248 = vector.load %arg21[%c0_126, %c0_127] : memref<16x1xf32, #tpu.memory_space<vmem>>, vector<16x1xf32>
    %249 = vector.broadcast %248 : vector<16x1xf32> to vector<16x256xf32>
    %250 = arith.addf %247, %249 : vector<16x256xf32>
    %cst_128 = arith.constant dense<0.000000e+00> : vector<16xf32>
    %251 = vector.multi_reduction <add>, %250, %cst_128 [1] : vector<16x256xf32> to vector<16xf32>
    %252 = vector.shape_cast %251 : vector<16xf32> to vector<16x1xf32>
    %253 = arith.mulf %250, %250 : vector<16x256xf32>
    %cst_129 = arith.constant dense<0.000000e+00> : vector<16xf32>
    %254 = vector.multi_reduction <add>, %253, %cst_129 [1] : vector<16x256xf32> to vector<16xf32>
    %255 = vector.shape_cast %254 : vector<16xf32> to vector<16x1xf32>
    %c0_130 = arith.constant 0 : index
    %c0_131 = arith.constant 0 : index
    %256 = vector.load %arg26[%c0_130, %c0_131] : memref<16x16xf32, #tpu.memory_space<vmem>>, vector<16x16xf32>
    %257 = tpu.concatenate %252, %255 in 1 : vector<16x1xf32>, vector<16x1xf32> -> vector<16x2xf32>
    %cst_132 = arith.constant dense<0.000000e+00> : vector<16x2xf32>
    %258 = tpu.matmul %256, %257, %cst_132 {dimension_numbers = #tpu.dot_dimension_numbers<[1], [0], [0], [1], [0, 0, 1, 1], [], []>} : vector<16x16xf32>, vector<16x2xf32>, vector<16x2xf32> -> vector<16x2xf32>
    %259 = vector.extract_strided_slice %258 {offsets = [0, 0], sizes = [16, 1], strides = [1, 1]} : vector<16x2xf32> to vector<16x1xf32>
    %260 = vector.extract_strided_slice %258 {offsets = [0, 1], sizes = [16, 1], strides = [1, 1]} : vector<16x2xf32> to vector<16x1xf32>
    %261 = arith.mulf %259, %259 : vector<16x1xf32>
    %262 = arith.subf %260, %261 : vector<16x1xf32>
    %c0_133 = arith.constant 0 : index
    %c0_134 = arith.constant 0 : index
    %263 = vector.load %arg31[%c0_133, %c0_134] : memref<16x1xf32, #tpu.memory_space<vmem>>, vector<16x1xf32>
    %cst_135 = arith.constant 9.99999974E-6 : f32
    %264 = vector.broadcast %cst_135 : f32 to vector<16x1xf32>
    %265 = arith.addf %262, %264 : vector<16x1xf32>
    %266 = math.rsqrt %265 : vector<16x1xf32>
    %267 = arith.mulf %263, %266 : vector<16x1xf32>
    %c0_136 = arith.constant 0 : index
    %c0_137 = arith.constant 0 : index
    %268 = vector.load %arg32[%c0_136, %c0_137] : memref<16x1xf32, #tpu.memory_space<vmem>>, vector<16x1xf32>
    %269 = arith.mulf %259, %267 : vector<16x1xf32>
    %270 = arith.subf %268, %269 : vector<16x1xf32>
    %271 = vector.broadcast %267 : vector<16x1xf32> to vector<16x256xf32>
    %272 = arith.mulf %250, %271 : vector<16x256xf32>
    %273 = vector.broadcast %270 : vector<16x1xf32> to vector<16x256xf32>
    %274 = arith.addf %272, %273 : vector<16x256xf32>
    %cst_138 = arith.constant 0.000000e+00 : f32
    %275 = vector.broadcast %cst_138 : f32 to vector<16x256xf32>
    %276 = arith.cmpf ogt, %274, %275 : vector<16x256xf32>
    %cst_139 = arith.constant 0.00999999977 : f32
    %277 = vector.broadcast %cst_139 : f32 to vector<16x256xf32>
    %278 = arith.mulf %277, %274 : vector<16x256xf32>
    %279 = arith.select %276, %274, %278 : vector<16x256xi1>, vector<16x256xf32>
    %280 = arith.truncf %279 : vector<16x256xf32> to vector<16x256xbf16>
    %c0_140 = arith.constant 0 : index
    %c0_141 = arith.constant 0 : index
    %281 = vector.load %arg11[%c0_140, %c0_141] : memref<256x400xbf16, #tpu.memory_space<vmem>>, vector<256x400xbf16>
    %cst_142 = arith.constant dense<0.000000e+00> : vector<16x400xf32>
    %282 = tpu.matmul %280, %281, %cst_142 {dimension_numbers = #tpu.dot_dimension_numbers<[1], [0], [0], [1], [0, 0, 1, 1], [], []>} : vector<16x256xbf16>, vector<256x400xbf16>, vector<16x400xf32> -> vector<16x400xf32>
    %283 = arith.truncf %282 : vector<16x400xf32> to vector<16x400xbf16>
    %cst_143 = arith.constant 0.000000e+00 : bf16
    %284 = vector.broadcast %cst_143 : bf16 to vector<16x21xbf16>
    %285 = vector.extract_strided_slice %283 {offsets = [0, 0], sizes = [16, 379], strides = [1, 1]} : vector<16x400xbf16> to vector<16x379xbf16>
    %286 = tpu.concatenate %284, %285 in 1 : vector<16x21xbf16>, vector<16x379xbf16> -> vector<16x400xbf16>
    %c0_144 = arith.constant 0 : index
    %c0_145 = arith.constant 0 : index
    %287 = vector.load %arg15[%c0_144, %c0_145] : memref<3x400xbf16, #tpu.memory_space<vmem>>, vector<1x400xbf16>
    %288 = vector.broadcast %287 : vector<1x400xbf16> to vector<16x400xbf16>
    %289 = arith.mulf %286, %288 : vector<16x400xbf16>
    %cst_146 = arith.constant 0.000000e+00 : bf16
    %290 = vector.broadcast %cst_146 : bf16 to vector<16x20xbf16>
    %291 = vector.extract_strided_slice %283 {offsets = [0, 0], sizes = [16, 380], strides = [1, 1]} : vector<16x400xbf16> to vector<16x380xbf16>
    %292 = tpu.concatenate %290, %291 in 1 : vector<16x20xbf16>, vector<16x380xbf16> -> vector<16x400xbf16>
    %cst_147 = arith.constant 0.000000e+00 : bf16
    %293 = vector.broadcast %cst_147 : bf16 to vector<16x19xbf16>
    %294 = vector.extract_strided_slice %283 {offsets = [0, 0], sizes = [16, 381], strides = [1, 1]} : vector<16x400xbf16> to vector<16x381xbf16>
    %295 = tpu.concatenate %293, %294 in 1 : vector<16x19xbf16>, vector<16x381xbf16> -> vector<16x400xbf16>
    %c2_148 = arith.constant 2 : index
    %c0_149 = arith.constant 0 : index
    %296 = vector.load %arg15[%c2_148, %c0_149] : memref<3x400xbf16, #tpu.memory_space<vmem>>, vector<1x400xbf16>
    %297 = vector.broadcast %296 : vector<1x400xbf16> to vector<16x400xbf16>
    %298 = arith.mulf %295, %297 : vector<16x400xbf16>
    %cst_150 = arith.constant 0.000000e+00 : bf16
    %299 = vector.broadcast %cst_150 : bf16 to vector<16x1xbf16>
    %300 = vector.extract_strided_slice %283 {offsets = [0, 0], sizes = [16, 399], strides = [1, 1]} : vector<16x400xbf16> to vector<16x399xbf16>
    %301 = tpu.concatenate %299, %300 in 1 : vector<16x1xbf16>, vector<16x399xbf16> -> vector<16x400xbf16>
    %c0_151 = arith.constant 0 : index
    %c0_152 = arith.constant 0 : index
    %302 = vector.load %arg15[%c0_151, %c0_152] : memref<3x400xbf16, #tpu.memory_space<vmem>>, vector<1x400xbf16>
    %303 = vector.broadcast %302 : vector<1x400xbf16> to vector<16x400xbf16>
    %304 = arith.mulf %301, %303 : vector<16x400xbf16>
    %cst_153 = arith.constant 0.000000e+00 : bf16
    %305 = vector.broadcast %cst_153 : bf16 to vector<16x1xbf16>
    %306 = vector.extract_strided_slice %283 {offsets = [0, 1], sizes = [16, 399], strides = [1, 1]} : vector<16x400xbf16> to vector<16x399xbf16>
    %307 = tpu.concatenate %306, %305 in 1 : vector<16x399xbf16>, vector<16x1xbf16> -> vector<16x400xbf16>
    %c2_154 = arith.constant 2 : index
    %c0_155 = arith.constant 0 : index
    %308 = vector.load %arg15[%c2_154, %c0_155] : memref<3x400xbf16, #tpu.memory_space<vmem>>, vector<1x400xbf16>
    %309 = vector.broadcast %308 : vector<1x400xbf16> to vector<16x400xbf16>
    %310 = arith.mulf %307, %309 : vector<16x400xbf16>
    %cst_156 = arith.constant 0.000000e+00 : bf16
    %311 = vector.broadcast %cst_156 : bf16 to vector<16x19xbf16>
    %312 = vector.extract_strided_slice %283 {offsets = [0, 19], sizes = [16, 381], strides = [1, 1]} : vector<16x400xbf16> to vector<16x381xbf16>
    %313 = tpu.concatenate %312, %311 in 1 : vector<16x381xbf16>, vector<16x19xbf16> -> vector<16x400xbf16>
    %c0_157 = arith.constant 0 : index
    %c0_158 = arith.constant 0 : index
    %314 = vector.load %arg15[%c0_157, %c0_158] : memref<3x400xbf16, #tpu.memory_space<vmem>>, vector<1x400xbf16>
    %315 = vector.broadcast %314 : vector<1x400xbf16> to vector<16x400xbf16>
    %316 = arith.mulf %313, %315 : vector<16x400xbf16>
    %cst_159 = arith.constant 0.000000e+00 : bf16
    %317 = vector.broadcast %cst_159 : bf16 to vector<16x20xbf16>
    %318 = vector.extract_strided_slice %283 {offsets = [0, 20], sizes = [16, 380], strides = [1, 1]} : vector<16x400xbf16> to vector<16x380xbf16>
    %319 = tpu.concatenate %318, %317 in 1 : vector<16x380xbf16>, vector<16x20xbf16> -> vector<16x400xbf16>
    %cst_160 = arith.constant 0.000000e+00 : bf16
    %320 = vector.broadcast %cst_160 : bf16 to vector<16x21xbf16>
    %321 = vector.extract_strided_slice %283 {offsets = [0, 21], sizes = [16, 379], strides = [1, 1]} : vector<16x400xbf16> to vector<16x379xbf16>
    %322 = tpu.concatenate %321, %320 in 1 : vector<16x379xbf16>, vector<16x21xbf16> -> vector<16x400xbf16>
    %c2_161 = arith.constant 2 : index
    %c0_162 = arith.constant 0 : index
    %323 = vector.load %arg15[%c2_161, %c0_162] : memref<3x400xbf16, #tpu.memory_space<vmem>>, vector<1x400xbf16>
    %324 = vector.broadcast %323 : vector<1x400xbf16> to vector<16x400xbf16>
    %325 = arith.mulf %322, %324 : vector<16x400xbf16>
    %326 = tpu.concatenate %289, %292, %298, %304, %283, %310, %316, %319, %325 in 0 : vector<16x400xbf16>, vector<16x400xbf16>, vector<16x400xbf16>, vector<16x400xbf16>, vector<16x400xbf16>, vector<16x400xbf16>, vector<16x400xbf16>, vector<16x400xbf16>, vector<16x400xbf16> -> vector<144x400xbf16>
    %c0_163 = arith.constant 0 : index
    %c0_164 = arith.constant 0 : index
    %327 = vector.load %arg22[%c0_163, %c0_164] : memref<2x144xbf16, #tpu.memory_space<vmem>>, vector<2x144xbf16>
    %cst_165 = arith.constant dense<0.000000e+00> : vector<2x400xf32>
    %328 = tpu.matmul %327, %326, %cst_165 {dimension_numbers = #tpu.dot_dimension_numbers<[1], [0], [0], [1], [0, 0, 1, 1], [], []>} : vector<2x144xbf16>, vector<144x400xbf16>, vector<2x400xf32> -> vector<2x400xf32>
    %c0_166 = arith.constant 0 : index
    %c0_167 = arith.constant 0 : index
    %329 = vector.load %arg23[%c0_166, %c0_167] : memref<2x1xf32, #tpu.memory_space<vmem>>, vector<2x1xf32>
    %330 = vector.broadcast %329 : vector<2x1xf32> to vector<2x400xf32>
    %331 = arith.addf %328, %330 : vector<2x400xf32>
    %cst_168 = arith.constant 0.000000e+00 : f32
    %332 = vector.broadcast %cst_168 : f32 to vector<2x400xf32>
    %333 = arith.maximumf %331, %332 : vector<2x400xf32>
    %c0_169 = arith.constant 0 : index
    %c0_170 = arith.constant 0 : index
    %334 = vector.load %arg33[%c0_169, %c0_170] : memref<2x400xf32, #tpu.memory_space<vmem>>, vector<2x400xf32>
    tpu.vector_store %arg33[%c0_169, %c0_170], %333 {strides = array<i32>} : memref<2x400xf32, #tpu.memory_space<vmem>>, vector<2x400xf32>,
    return
  }
}

</mosaic_0001>

<bundles_post_ra>
// kernel: generator_forward.1
= control target key start
LH: loop header
LB: loop body
LE: loop exit
PB: predicated region body
PF: predicated region fallthrough
CT: control target
= control target key end

     0   :  { %v2960_v0 = vmov 0.0   ;;  %s2961_s3 = smov 2   ;;  %vm2962_vm0 = vmmov 0   ;;  %s2963_s10 = smov 4   ;;  %vm148_vm1 = vcmask 64512   ;;  %v2964_v5 = vmov 0.0|0.0   ;;  %s3584_s0 = inlined_call_operand.smem [shape: u32[34], index: -1, kind: input, shape index: {}] }
   0x1   :  { %2687 = vmatprep.subr.mxu0 %v2960_v0  ;;  %s2516_s6 = sld [smem:[%s3584_s0 + %s2961_s3]]   ;;  %2689 = vmatprep.mubr.msk.f32.mxu0 %vm2962_vm0, %v2960_v0  ;;  %s2965_s14 = smov 3   ;;  %vm236_vm3 = vcmask 261120   ;;  %vm424_vm5 = vcmask 1041408   ;;  %vm426_vm6 = vcmask 1043456   ;;  %vm428_vm7 = vcmask 1045504  }
   0x2   :  { %s1_s9 = sld [smem:[%s3584_s0]]   ;;  %2714 = vmatprep.subr.bf16.mxu1 %v2960_v0  ;;  %2716 = vmatprep.mubr.msk.bf16.mxu1 %vm2962_vm0, %v2960_v0  ;;  %s2966_s18 = smov 6   ;;  %vm435_vm8 = vcmask 31744   ;;  %v2978_v53 = vmov 0   ;;  %vm578_vm9 = vcmask 130048   ;;  %v496_v62 = vlaneseq }
   0x3   :  { %s2518_s13 = sld [smem:[%s3584_s0 + %s2963_s10]]   ;;  %s2967_s22 = smov 5   ;;  %2826 = vset.pattern.permute.xlu1 %v2978_v53  ;;  %2827 = vset.pattern.permute.xlu0 %v2978_v53  ;;  %vm487_vm10 = vcmask 39936   ;;  %vm508_vm11 = vcmask 23552   ;;  %vm2557_vm12 = vmneg %vm435_vm8  ;;  %vm523_vm13 = vcmask 7168   ;;  %vm530_vm14 = vcmask 121856  }
   0x4   :  { %s2517_s17 = sld [smem:[%s3584_s0 + %s2965_s14]]   ;;  %s2968_s26 = smov 1   ;;  %v3098_v63 = vshrl.u32 %v496_v62, 7  ;;  %vm537_vm15 = vcmask 105472  }
   0x5   :  { %s2520_s21 = sld [smem:[%s3584_s0 + %s2966_s18]]   ;;  %s2969_s30 = smov 7  }
   0x6   :  { %s2519_s25 = sld [smem:[%s3584_s0 + %s2967_s22]]   ;;  %s2970_s4 = smov 8  }
   0x7   :  { %v140_v1 = vld [vmem:[%s2516_s6] sm:$0xff]  ;;  %s2515_s29 = sld [smem:[%s3584_s0 + %s2968_s26]]   ;;  %s2971_s8 = smov 112  }
   0x8   :  { %v139_v2 = vld [vmem:[%s1_s9] sm:$0x3]  ;;  %2688 = vmatpush3.msra.mxu0 %v140_v1  ;;  %s2521_s3 = sld [smem:[%s3584_s0 + %s2969_s30]]   ;;  %s2972_s9 = smov 108  }
   0x9   :  { %v225_v3 = vld [vmem:[%s2518_s13] sm:$0xff]  ;;  %v226_v4 = vld [vmem:[%s2518_s13 + $0x8] sm:$0xff]  ;;  %2690 = vmatmul.mubr.msk.f32.vlgmr.msra.gmra.mrb[0].mxu0 %vm148_vm1, %v139_v2  ;;  %2747 = vmatprep.subr.bf16.mxu0 %v2964_v5  ;;  %v227_v7 = vld [vmem:[%s2518_s13 + $0x10] sm:$0xff]  ;;  %s2522_s7 = sld [smem:[%s3584_s0 + %s2970_s4]]   ;;  %s2973_s11 = smov 124  }
   0xa   :  { %v2748_v6 = vpack.c.bf16 %v226_v4, %v225_v3  ;;  %2700 = vmatprep.mubr.msk.f32.mxu0 %vm2962_vm0, %v2960_v0  ;;  %v228_v8 = vld [vmem:[%s2518_s13 + $0x18] sm:$0xff]  ;;  %v2548_v10 = vld [vmem:[%s2517_s17] ss:$0 sm:$0xff]  ;;  %s2974_s12 = smov 120   ;;  %s2975_s13 = smov 104   ;;  %v3101_v3 = vsub.s32 0, %v3098_v63 }
   0xb   :  { %v2751_v9 = vpack.c.bf16 %v228_v8, %v227_v7  ;;  %v312_v12 = vld [vmem:[%s2520_s21] sm:$0xff]  ;;  %v313_v13 = vld [vmem:[%s2520_s21 + $0x8] sm:$0xff]  ;;  %v314_v19 = vld [vmem:[%s2520_s21 + $0x10] sm:$0xff]  ;;  %s2976_s15 = smov 116   ;;  %s2977_s16 = smov 100  }
   0xc   :  { %2749 = vmatpush3.bf16.msra.mxu0 %v2748_v6  ;;  %v2754_v17 = vpack.c.bf16 %v313_v13, %v312_v12  ;;  %v315_v20 = vld [vmem:[%s2520_s21 + $0x18] sm:$0xff]  ;;  %v2550_v22 = vld [vmem:[%s2519_s25] ss:$0 sm:$0xff]  ;;  %s2979_s17 = smov 125   ;;  %s2980_s18 = smov 127  }
   0xd   :  { %2750 = vmatprep.subr.bf16.mxu0 %v2964_v5  ;;  %v2757_v21 = vpack.c.bf16 %v315_v20, %v314_v19  ;;  %v310_v24 = vld [vmem:[%s2515_s29] sm:$0x3]  ;;  %s2981_s19 = smov 123   ;;  %s2982_s20 = smov 16  }
   0xe   :  { %v2552_v28 = vld [vmem:[%s2521_s3] ss:$0 sm:$0xff]  ;;  %s2984_s27 = smov 12   ;;  %s2985_s2 = smov 24  }
   0xf   :  { %v434_v33 = vld [vmem:[%s2522_s7] sm:$0x3]  ;;  %s2526_s1 = sld [smem:[%s3584_s0 + %s2984_s27]]   ;;  %s2986_s7 = smov 27  }
  0x10   :  { %2752 = vmatpush3.bf16.msra.mxu0 %v2751_v9  ;;  %v440_v34 = vsel %vm424_vm5, %v434_v33, 0  ;;  %s2538_s6 = sld [smem:[%s3584_s0 + %s2985_s2]]   ;;  %s2988_s23 = smov 9  }
  0x11   :  { %2753 = vmatprep.subr.bf16.mxu0 %v2964_v5  ;;  %2715 = vmatpush3.bf16.msra.mxu1 %v440_v34  ;;  %s2523_s24 = sld [smem:[%s3584_s0 + %s2988_s23]]   ;;  %s2991_s2 = smov 119  }
  0x12   :  { %s3007_s3 = smov 32  }
  0x15   :  { %v492_v1 = vld [vmem:[%s2526_s1] sm:$0x1] }
  0x16   :  { %v494_v2 = vpack.i.b16 %v492_v1, %v492_v1 }
  0x18   :  { %v499_v4 = vrot.slane %v494_v2, %v3101_v3 }
  0xdc   :  { %v218_v11 = vpop.f32.mrb[0].mxu0 }
  0xdd   :  { %v219_v14 = vadd.f32 %v2548_v10, %v218_v11  ;;  %v2691_v15 = vpop.f32.mrb[1].mxu0  ;;  %v3105_v11 = vsub.s32 1, %v3098_v63 }
  0xdf   :  { %vm222_vm2 = vcmp.gt.f32.partialorder %v219_v14, 0.0  ;;  %v223_v16 = vmul.f32 0.01, %v219_v14 }
  0xe1   :  { %v224_v18 = vsel %vm222_vm2, %v219_v14, %v223_v16  ;;  %vm550_vm2 = vcmask 89088  }
  0xe2   :  { %2701 = vmatmul.mubr.msk.f32.vlgmr.msra.gmra.mrb[2].mxu0 %vm236_vm3, %v224_v18 }
  0xe3   :  { %2755 = vmatpush3.bf16.msra.mxu0 %v2754_v17  ;;  %2711 = vmatprep.mubr.msk.f32.mxu0 %vm2962_vm0, %v2960_v0 }
  0xe4   :  { %2756 = vmatprep.subr.bf16.mxu0 %v2964_v5  ;;  %v512_v5 = vld [vmem:[%s2526_s1] sm:$0x2]  ;;  %s2990_s1 = smov 121  }
  0xe5   :  { %v514_v10 = vpack.i.b16 %v512_v5, %v512_v5 }
  0xe7   :  { %2758 = vmatpush3.bf16.msra.mxu0 %v2757_v21  ;;  %v519_v13 = vrot.slane %v514_v10, %v3105_v11 }
  0xe8   :  { %582 = vmatprep.subr.bf16.mxu0 %v2978_v53 }
 0x1b5   :  { %v306_v23 = vpop.f32.mrb[2].mxu0 }
 0x1b6   :  { %v307_v25 = vadd.f32 %v2550_v22, %v306_v23  ;;  %v2702_v26 = vpop.f32.mrb[3].mxu0 }
 0x1b8   :  { %v311_v27 = vmul.f32 %v310_v24, %v307_v25 }
 0x1ba   :  { %2712 = vmatmul.mubr.msk.f32.vlgmr.msra.gmra.mrb[4].mxu0 %vm236_vm3, %v311_v27  ;;  %vm544_vm3 = vcmask 97280  }
 0x28d   :  { %v392_v29 = vpop.f32.mrb[4].mxu0 }
 0x28e   :  { %v393_v30 = vadd.f32 %v2552_v28, %v392_v29  ;;  %v2713_v31 = vpop.f32.mrb[5].mxu0 }
 0x290   :  { %vm396_vm4 = vcmp.gt.f32.partialorder %v393_v30, 0.0  ;;  %v397_v32 = vmul.f32 0.01, %v393_v30 }
 0x292   :  { %v398_v35 = vsel %vm396_vm4, %v393_v30, %v397_v32 }
 0x293   :  { %412 = vrot.lane.b32.xlu0 %v398_v35, %s2971_s8  ;;  %v400_v36 = vrot.slane %v398_v35, 6  ;;  %v404_v37 = vrot.slane %v398_v35, 4  ;;  %v408_v38 = vrot.slane %v398_v35, 2 }
 0x295   :  { %415 = vrot.lane.b32.xlu1 %v400_v36, %s2972_s9 }
 0x297   :  { %401 = vrot.lane.b32.xlu0 %v400_v36, %s2973_s11 }
 0x299   :  { %405 = vrot.lane.b32.xlu1 %v404_v37, %s2974_s12 }
 0x29b   :  { %418 = vrot.lane.b32.xlu0 %v404_v37, %s2975_s13 }
 0x29d   :  { %409 = vrot.lane.b32.xlu1 %v408_v38, %s2976_s15  ;;  %s2541_s15 = sld [smem:[%s3584_s0 + %s2986_s7]]   ;;  %s3001_s7 = smov 21  }
 0x29f   :  { %421 = vrot.lane.b32.xlu0 %v408_v38, %s2977_s16  ;;  %s2987_s16 = smov 28  }
 0x2a0   :  { %s2542_s21 = sld [smem:[%s3584_s0 + %s2987_s16]]   ;;  %s3003_s16 = smov 14  }
 0x2a3   :  { %v734_v5 = vld [vmem:[%s2541_s15] sm:$0xff] }
 0x305   :  { %v413_v39 = vpop.permute.xlu0 %412 }
 0x307   :  { %v416_v40 = vpop.permute.xlu1 %415 }
 0x308   :  { %v430_v46 = vsel %vm424_vm5, %v413_v39, %v416_v40 }
 0x309   :  { %v402_v41 = vpop.permute.xlu0 %401 }
 0x30a   :  { %v425_v44 = vsel %vm424_vm5, %v398_v35, %v402_v41 }
 0x30b   :  { %v406_v42 = vpop.permute.xlu1 %405 }
 0x30c   :  { %v427_v47 = vsel %vm426_vm6, %v425_v44, %v406_v42 }
 0x30d   :  { %v419_v43 = vpop.permute.xlu0 %418 }
 0x30e   :  { %v431_v48 = vsel %vm426_vm6, %v430_v46, %v419_v43  ;;  %vm843_vm6 = vcmask 72704  }
 0x30f   :  { %v410_v45 = vpop.permute.xlu1 %409 }
 0x310   :  { %v429_v50 = vsel %vm428_vm7, %v427_v47, %v410_v45  ;;  %v637_v45 = vld [vmem:[%s2538_s6] sm:$0xff] }
 0x311   :  { %v422_v49 = vpop.permute.xlu0 %421 }
 0x312   :  { %v432_v51 = vsel %vm428_vm7, %v431_v48, %v422_v49  ;;  %vm863_vm7 = vcmask 56320  }
 0x313   :  { %v433_v52 = vpack.c.bf16 %v432_v51, %v429_v50 }
 0x315   :  { %2717 = vmatmul.mubr.msk.bf16.vlgmr.msra.gmra.mrb[0].mxu1 %vm435_vm8, %v433_v52  ;;  %vm2566_vm8 = vmneg %vm148_vm1  ;;  %vm891_vm1 = vcmask 465920  }
 0x316   :  { %2724 = vmatprep.mubr.msk.f32.mxu1 %vm578_vm9, %v637_v45 }
 0x3e8   :  { %v476_v54 = vpop.f32.mrb[0].mxu1 }
 0x3e9   :  { %v2718_v55 = vpop.f32.mrb[1].mxu1 }
 0x3ea   :  { %v479_v56 = vpop.f32.mrb[2].mxu1 }
 0x3eb   :  { %v483_v57 = vpack.c.bf16 %v479_v56, %v476_v54  ;;  %v2719_v58 = vpop.f32.mrb[3].mxu1  ;;  %v638_v54 = vld [vmem:[%s2538_s6 + $0x8] sm:$0xff]  ;;  %s2993_s6 = smov 13  }
 0x3ec   :  { %s2527_s13 = sld [smem:[%s3584_s0 + %s2993_s6]]   ;;  %s3000_s6 = smov 113  }
 0x3ed   :  { %501 = vrot.lane.b32.xlu0 %v483_v57, %s2963_s10  ;;  %485 = vrot.lane.b32.xlu1 %v483_v57, %s2967_s22  ;;  %s3087_s10 = sld [smem:[%s3584_s0 + %s2982_s20]]   ;;  %s2996_s22 = smov 29  }
 0x3ee   :  { %s2543_s28 = sld [smem:[%s3584_s0 + %s2996_s22]]  }
 0x3f1   :  { %521 = vrot.lane.b32.xlu0 %v483_v57, %s2968_s26  ;;  %506 = vrot.lane.b32.xlu1 %v483_v57, %s2965_s14  ;;  %s2983_s14 = smov 17  }
 0x3f2   :  { %s2531_s25 = sld [smem:[%s3584_s0 + %s2983_s14]]  }
 0x3f3   :  { %v2828_v59 = vld [vmem:[%s3087_s10 + $0x4] ss:$8 sps:$4 sm:$0xff]   ;;  %v2830_v30 = vld [vmem:[%s3087_s10] ss:$8 sps:$4 sm:$0xff]  }
 0x3f4   :  { %2559 = vmatprep.mubr.msk.bf16.mxu0 %vm578_vm9, %v2828_v59 }
 0x3f5   :  { %535 = vrot.lane.b32.xlu0 %v483_v57, %s2979_s17  ;;  %528 = vrot.lane.b32.xlu1 %v483_v57, %s2980_s18 }
 0x3f8   :  { %v557_v60 = vld [vmem:[%s2531_s25] sm:$0xff]  ;;  %v558_v61 = vld [vmem:[%s2531_s25 + $0x8] sm:$0xff]  ;;  %s2989_s25 = smov 19  }
 0x3f9   :  { %548 = vrot.lane.b32.xlu0 %v483_v57, %s2981_s19  ;;  %542 = vrot.lane.b32.xlu1 %v483_v57, %s2973_s11  ;;  %s2533_s29 = sld [smem:[%s3584_s0 + %s2989_s25]]   ;;  %s2995_s19 = smov 10  }
 0x3fa   :  { %s3220_s10 = sld [smem:[%s3584_s0 + %s2995_s19]]  }
 0x3fb   :  { %s2546_s11 = sld [smem:[%s3584_s0 + %s3007_s3]]  }
 0x3fd   :  { %561 = vperm.xlu1 %2826, %v557_v60   ;;  %566 = vperm.xlu0 %2827, %v558_v61  }
 0x45f   :  { %v486_v6 = vpop.permute.xlu1 %485  ;;  %v502_v8 = vpop.permute.xlu0 %501 }
 0x460   :  { %v490_v7 = vsel %vm487_vm10, 0, %v486_v6  ;;  %vm884_vm10 = vcmask 515072  }
 0x461   :  { %v500_v9 = vmul.bf16 %v499_v4, %v490_v7 }
 0x463   :  { %583 = vmatpush1.bf16.msra.mxu0 %v500_v9  ;;  %v507_v12 = vpop.permute.xlu1 %506  ;;  %v522_v15 = vpop.permute.xlu0 %521  ;;  %v750_v9 = vld [vmem:[%s2542_s21] sm:$0xff] }
 0x464   :  { %584 = vmatprep.subr.bf16.mxu0 %v2978_v53  ;;  %v510_v14 = vsel %vm508_vm11, 0, %v507_v12  ;;  %v525_v17 = vsel %vm523_vm13, 0, %v522_v15  ;;  %v751_v15 = vld [vmem:[%s2542_s21 + $0x8] sm:$0xff]  ;;  %vm904_vm11 = vcmask 449536   ;;  %s2528_s21 = sld [smem:[%s3584_s0 + %s3003_s16]]  }
 0x465   :  { %v520_v16 = vmul.bf16 %v519_v13, %v510_v14  ;;  %v527_v18 = vmul.bf16 %v525_v17, %v499_v4 }
 0x467   :  { %2558 = vmatpush1.bf16.msk.msra.mxu0 %vm2557_vm12, %v502_v8  ;;  %v529_v19 = vpop.permute.xlu1 %528  ;;  %v536_v21 = vpop.permute.xlu0 %535  ;;  %v735_v8 = vld [vmem:[%s2541_s15 + $0x8] sm:$0xff]  ;;  %vm898_vm12 = vcmask 457728   ;;  %s3002_s15 = smov 111  }
 0x468   :  { %586 = vmatprep.subr.bf16.mxu0 %v2978_v53  ;;  %v532_v20 = vsel %vm530_vm14, %v529_v19, 0  ;;  %v539_v23 = vsel %vm537_vm15, %v536_v21, 0  ;;  %vm976_vm15 = vcmask 523264  }
 0x469   :  { %v534_v22 = vmul.bf16 %v532_v20, %v519_v13  ;;  %v541_v24 = vmul.bf16 %v539_v23, %v499_v4 }
 0x46b   :  { %587 = vmatpush1.bf16.msra.mxu0 %v520_v16  ;;  %v549_v25 = vpop.permute.xlu0 %548  ;;  %v543_v26 = vpop.permute.xlu1 %542 }
 0x46c   :  { %588 = vmatprep.subr.bf16.mxu0 %v2978_v53  ;;  %v552_v27 = vsel %vm550_vm2, %v549_v25, 0  ;;  %v546_v28 = vsel %vm544_vm3, %v543_v26, 0 }
 0x46d   :  { %v554_v29 = vmul.bf16 %v552_v27, %v519_v13 }
 0x46f   :  { %589 = vmatpush1.bf16.msra.mxu0 %v527_v18  ;;  %v2831_v18 = vld [vmem:[%s2523_s24] sm:$0xff]   ;;  %s3005_s24 = smov 11  }
 0x470   :  { %590 = vmatprep.subr.bf16.mxu0 %v2978_v53 }
 0x473   :  { %591 = vmatpush1.bf16.msra.mxu0 %v483_v57 }
 0x474   :  { %592 = vmatprep.subr.bf16.mxu0 %v2978_v53 }
 0x477   :  { %593 = vmatpush1.bf16.msra.mxu0 %v534_v22 }
 0x478   :  { %594 = vmatprep.subr.bf16.mxu0 %v2978_v53 }
 0x47b   :  { %595 = vmatpush1.bf16.msra.mxu0 %v541_v24 }
 0x47c   :  { %596 = vmatprep.subr.bf16.mxu0 %v2978_v53  ;;  %v562_v31 = vpop.permute.xlu1 %561  ;;  %v567_v33 = vpop.permute.xlu0 %566 }
 0x47f   :  { %597 = vmatpush1.bf16.msra.mxu0 %v546_v28 }
 0x480   :  { %598 = vmatprep.subr.bf16.mxu0 %v2978_v53 }
 0x483   :  { %599 = vmatpush1.bf16.msra.mxu0 %v554_v29 }
 0x486   :  { %615 = vmatmul.mubr.bf16.vlgmr.msra.gmra.mrb[8].mxu0 %v2830_v30 }
 0x559   :  { %v616_v32 = vpop.f32.mrb[8].mxu0 }
 0x55a   :  { %v3120_v34 = vadd.f32 %v616_v32, %v562_v31  ;;  %v618_v35 = vpop.f32.mrb[9].mxu0 }
 0x55b   :  { %v619_v36 = vpop.f32.mrb[10].mxu0 }
 0x55c   :  { %v3122_v37 = vadd.f32 %v619_v36, %v567_v33  ;;  %v621_v38 = vpop.f32.mrb[11].mxu0  ;;  %v623_v39 = vsel %vm578_vm9, %v3120_v34, 0.0  ;;  %v629_v40 = vmul.f32 %v3120_v34, %v3120_v34 }
 0x55d   :  { %624 = vadd.xlane.f32.xlu1 %v623_v39  ;;  %v911_v38 = vld [vmem:[%s2533_s29] sm:$0xff] }
 0x55e   :  { %v626_v41 = vsel %vm578_vm9, %v3122_v37, 0.0  ;;  %v630_v42 = vmul.f32 %v3122_v37, %v3122_v37  ;;  %v631_v43 = vsel %vm578_vm9, %v629_v40, 0.0  ;;  %v847_v40 = vld [vmem:[%s2527_s13] sm:$0x1] }
 0x55f   :  { %627 = vadd.xlane.f32.xlu0 %v626_v41  ;;  %v849_v41 = vpack.i.b16 %v847_v40, %v847_v40 }
 0x560   :  { %v634_v44 = vsel %vm578_vm9, %v630_v42, 0.0 }
 0x561   :  { %632 = vadd.xlane.f32.xlu1 %v631_v43  ;;  %v854_v42 = vrot.slane %v849_v41, %v3101_v3  ;;  %v867_v43 = vld [vmem:[%s2527_s13] sm:$0x2]  ;;  %s3009_s13 = smov 22  }
 0x563   :  { %635 = vadd.xlane.f32.xlu0 %v634_v44 }
 0x5ea   :  { %v625_v46 = vpop.xlane.xlu1 %624 }
 0x5ec   :  { %v628_v47 = vpop.xlane.xlu0 %627 }
 0x5ee   :  { %v633_v48 = vpop.xlane.xlu1 %632 }
 0x5ef   :  { %v639_v50 = vsel %vm523_vm13, %v625_v46, %v633_v48  ;;  %v869_v48 = vpack.i.b16 %v867_v43, %v867_v43  ;;  %v2835_v43 = vld [vmem:[%s3220_s10] ss:$8 sps:$4 sm:$0xff]  }
 0x5f0   :  { %v636_v49 = vpop.xlane.xlu0 %635 }
 0x5f1   :  { %v640_v51 = vsel %vm523_vm13, %v628_v47, %v636_v49 }
 0x5f2   :  { %v2759_v52 = vpack.c.bf16 %v640_v51, %v639_v50  ;;  %v874_v50 = vrot.slane %v869_v48, %v3105_v11  ;;  %v1089_v48 = vld [vmem:[%s2543_s28 + $0x8] sm:$0xff] }
 0x5f4   :  { %2760 = vmatprep.subr.bf16.mxu1 %v2759_v52 }
 0x5f5   :  { %2762 = vmatpush3.bf16.msra.mxu1 %v2759_v52 }
 0x5f6   :  { %2727 = vmatprep.subr.bf16.mxu1 %v2960_v0 }
 0x5f8   :  { %2725 = vmatmul.mubr.msk.f32.vlgmr.msra.gmra.mrb[4].mxu1 %vm578_vm9, %v638_v54 }
 0x5f9   :  { %2729 = vmatprep.mubr.msk.bf16.mxu1 %vm2962_vm0, %v2960_v0  ;;  %2728 = vmatpush3.bf16.msra.mxu1 %v2831_v18 }
 0x5fa   :  { %935 = vmatprep.subr.bf16.mxu1 %v2978_v53 }
 0x6cb   :  { %v2726_v55 = vpop.f32.mrb[4].mxu1 }
 0x6cc   :  { %v723_v56 = vmul.f32 %v2726_v55, %v2726_v55  ;;  %v713_v57 = vpop.f32.mrb[5].mxu1 }
 0x6cd   :  { %v722_v58 = vmul.f32 %v713_v57, %v713_v57 }
 0x6ce   :  { %728 = vrot.lane.b32.xlu0 %v723_v56, %s2968_s26 }
 0x6cf   :  { %726 = vrot.lane.b32.xlu1 %v722_v58, %s2968_s26 }
 0x740   :  { %v729_v59 = vpop.permute.xlu0 %728 }
 0x741   :  { %v727_v60 = vpop.permute.xlu1 %726  ;;  %v733_v61 = vsub.f32 %v2726_v55, %v729_v59 }
 0x742   :  { %v732_v62 = vsub.f32 %v713_v57, %v727_v60 }
 0x743   :  { %v737_v2 = vadd.f32 1e-05, %v733_v61 }
 0x744   :  { %v736_v1 = vadd.f32 1e-05, %v732_v62 }
 0x746   :  { %2948 = vrsqrt.f32 %v736_v1 }
 0x747   :  { %2950 = vrsqrt.f32 %v737_v2 }
 0x750   :  { %v2949_v4 = vpop.eup %2948 }
 0x751   :  { %742 = vrot.lane.b32.xlu1 %v2949_v4, %s2980_s18  ;;  %v2951_v0 = vpop.eup %2950 }
 0x755   :  { %744 = vrot.lane.b32.xlu1 %v2951_v0, %s2980_s18 }
 0x7c3   :  { %v743_v6 = vpop.permute.xlu1 %742 }
 0x7c4   :  { %v748_v7 = vmul.f32 %v743_v6, %v734_v5 }
 0x7c6   :  { %v752_v10 = vmul.f32 %v748_v7, %v713_v57  ;;  %758 = vperm.xlu0 %2827, %v748_v7  }
 0x7c7   :  { %v745_v12 = vpop.permute.xlu1 %744 }
 0x7c8   :  { %v749_v13 = vmul.f32 %v745_v12, %v735_v8  ;;  %v754_v14 = vsub.f32 %v750_v9, %v752_v10 }
 0x7ca   :  { %v753_v16 = vmul.f32 %v2726_v55, %v749_v13  ;;  %770 = vperm.xlu0 %2827, %v754_v14   ;;  %763 = vperm.xlu1 %2826, %v749_v13  }
 0x7cc   :  { %v755_v17 = vsub.f32 %v751_v15, %v753_v16 }
 0x7ce   :  { %775 = vperm.xlu1 %2826, %v755_v17  }
 0x845   :  { %v759_v19 = vpop.permute.xlu0 %758 }
 0x846   :  { %v766_v20 = vmul.f32 %v759_v19, %v3120_v34 }
 0x849   :  { %v771_v21 = vpop.permute.xlu0 %770  ;;  %v764_v22 = vpop.permute.xlu1 %763 }
 0x84a   :  { %v778_v23 = vadd.f32 %v771_v21, %v766_v20  ;;  %v767_v24 = vmul.f32 %v764_v22, %v3122_v37  ;;  %v912_v37 = vld [vmem:[%s2533_s29 + $0x8] sm:$0xff]  ;;  %s2997_s29 = smov 30  }
 0x84c   :  { %v782_v26 = vmul.f32 0.01, %v778_v23  ;;  %vm780_vm0 = vcmp.gt.f32.partialorder %v778_v23, 0.0 }
 0x84d   :  { %v776_v25 = vpop.permute.xlu1 %775 }
 0x84e   :  { %v779_v27 = vadd.f32 %v776_v25, %v767_v24  ;;  %v784_v29 = vsel %vm780_vm0, %v778_v23, %v782_v26  ;;  %vm1243_vm0 = vcmask 138240  }
 0x850   :  { %vm781_vm4 = vcmp.gt.f32.partialorder %v779_v27, 0.0  ;;  %v783_v28 = vmul.f32 0.01, %v779_v27 }
 0x852   :  { %v785_v30 = vsel %vm781_vm4, %v779_v27, %v783_v28  ;;  %vm2584_vm4 = vmneg %vm578_vm9 }
 0x853   :  { %v786_v31 = vpack.c.bf16 %v785_v30, %v784_v29 }
 0x855   :  { %2730 = vmatmul.mubr.msk.bf16.vlgmr.msra.gmra.mrb[8].mxu1 %vm578_vm9, %v786_v31 }
 0x928   :  { %v832_v32 = vpop.f32.mrb[8].mxu1 }
 0x929   :  { %v2731_v33 = vpop.f32.mrb[9].mxu1 }
 0x92a   :  { %v835_v35 = vpop.f32.mrb[10].mxu1 }
 0x92b   :  { %v839_v34 = vpack.c.bf16 %v835_v35, %v832_v32  ;;  %v2732_v36 = vpop.f32.mrb[11].mxu1 }
 0x92d   :  { %856 = vrot.lane.b32.xlu1 %v839_v34, %s2970_s4  ;;  %841 = vrot.lane.b32.xlu0 %v839_v34, %s2988_s23  ;;  %s2992_s4 = smov 18  }
 0x92e   :  { %s3173_s5 = sld [smem:[%s3584_s0 + %s2992_s4]]  }
 0x92f   :  { %s2544_s4 = sld [smem:[%s3584_s0 + %s2997_s29]]  }
 0x930   :  { %s3345_s29 = sld [smem:[%s3584_s0 + %s3005_s24]]  }
 0x931   :  { %876 = vrot.lane.b32.xlu1 %v839_v34, %s2968_s26  ;;  %861 = vrot.lane.b32.xlu0 %v839_v34, %s2969_s30  ;;  %s2998_s30 = smov 15  }
 0x934   :  { %v2832_v39 = vld [vmem:[%s3173_s5 + $0x4] ss:$8 sps:$4 sm:$0xff]   ;;  %v2834_v6 = vld [vmem:[%s3173_s5] ss:$8 sps:$4 sm:$0xff]  }
 0x935   :  { %889 = vrot.lane.b32.xlu1 %v839_v34, %s2990_s1  ;;  %882 = vrot.lane.b32.xlu0 %v839_v34, %s2980_s18  ;;  %s3006_s1 = smov 31  }
 0x936   :  { %2568 = vmatprep.mubr.msk.bf16.mxu1 %vm578_vm9, %v2832_v39 }
 0x939   :  { %902 = vrot.lane.b32.xlu1 %v839_v34, %s2991_s2  ;;  %896 = vrot.lane.b32.xlu0 %v839_v34, %s2974_s12  ;;  %s2994_s12 = smov 25  }
 0x93a   :  { %s2539_s17 = sld [smem:[%s3584_s0 + %s2994_s12]]  }
 0x93b   :  { %s2535_s12 = sld [smem:[%s3584_s0 + %s3001_s7]]  }
 0x93d   :  { %920 = vperm.xlu1 %2826, %v912_v37   ;;  %915 = vperm.xlu0 %2827, %v911_v38  }
 0x940   :  { %v991_v22 = vld [vmem:[%s2539_s17] sm:$0xff]  ;;  %v992_v30 = vld [vmem:[%s2539_s17 + $0x8] sm:$0xff]  ;;  %s3012_s17 = smov 107  }
 0x941   :  { %2737 = vmatprep.mubr.msk.f32.mxu0 %vm578_vm9, %v991_v22 }
 0x99f   :  { %v842_v44 = vpop.permute.xlu0 %841  ;;  %v857_v46 = vpop.permute.xlu1 %856 }
 0x9a0   :  { %v845_v45 = vsel %vm843_vm6, 0, %v842_v44  ;;  %v2837_v44 = vld [vmem:[%s3220_s10 + $0x4] ss:$8 sps:$4 sm:$0xff]   ;;  %vm1338_vm6 = vcmask 1039360  }
 0x9a1   :  { %v855_v47 = vmul.bf16 %v854_v42, %v845_v45  ;;  %v1088_v45 = vld [vmem:[%s2543_s28] sm:$0xff] }
 0x9a3   :  { %936 = vmatpush1.bf16.msra.mxu1 %v855_v47  ;;  %v862_v49 = vpop.permute.xlu0 %861  ;;  %v877_v52 = vpop.permute.xlu1 %876 }
 0x9a4   :  { %937 = vmatprep.subr.bf16.mxu1 %v2978_v53  ;;  %v865_v51 = vsel %vm863_vm7, 0, %v862_v49  ;;  %v879_v55 = vsel %vm523_vm13, 0, %v877_v52  ;;  %v1104_v49 = vld [vmem:[%s2544_s4] sm:$0xff]  ;;  %v2840_v52 = vld [vmem:[%s3220_s10 + $0x14] ss:$8 sps:$4 sm:$0xff]   ;;  %vm1351_vm7 = vcmask 924672  }
 0x9a5   :  { %v875_v54 = vmul.bf16 %v874_v50, %v865_v51  ;;  %v881_v56 = vmul.bf16 %v879_v55, %v854_v42  ;;  %v2838_v51 = vld [vmem:[%s3220_s10 + $0x10] ss:$8 sps:$4 sm:$0xff]  }
 0x9a7   :  { %2567 = vmatpush1.bf16.msk.msra.mxu1 %vm2566_vm8, %v857_v46  ;;  %v883_v57 = vpop.permute.xlu0 %882  ;;  %v890_v59 = vpop.permute.xlu1 %889  ;;  %vm1375_vm8 = vcmask 908288  }
 0x9a8   :  { %939 = vmatprep.subr.bf16.mxu1 %v2978_v53  ;;  %v886_v58 = vsel %vm884_vm10, %v883_v57, 0  ;;  %v893_v61 = vsel %vm891_vm1, %v890_v59, 0  ;;  %v1105_v57 = vld [vmem:[%s2544_s4 + $0x8] sm:$0xff]  ;;  %vm1364_vm10 = vcmask 916480  }
 0x9a9   :  { %v888_v60 = vmul.bf16 %v886_v58, %v874_v50  ;;  %v895_v62 = vmul.bf16 %v893_v61, %v854_v42  ;;  %v2843_v59 = vld [vmem:[%s3220_s10 + $0x24] ss:$8 sps:$4 sm:$0xff]   ;;  %v2841_v61 = vld [vmem:[%s3220_s10 + $0x20] ss:$8 sps:$4 sm:$0xff]  }
 0x9ab   :  { %940 = vmatpush1.bf16.msra.mxu1 %v875_v54  ;;  %v903_v1 = vpop.permute.xlu1 %902  ;;  %v897_v2 = vpop.permute.xlu0 %896 }
 0x9ac   :  { %941 = vmatprep.subr.bf16.mxu1 %v2978_v53  ;;  %v906_v4 = vsel %vm904_vm11, %v903_v1, 0  ;;  %v900_v0 = vsel %vm898_vm12, %v897_v2, 0  ;;  %v2844_v1 = vld [vmem:[%s3220_s10 + $0x30] ss:$8 sps:$4 sm:$0xff]  }
 0x9ad   :  { %v908_v5 = vmul.bf16 %v906_v4, %v874_v50 }
 0x9af   :  { %942 = vmatpush1.bf16.msra.mxu1 %v881_v56 }
 0x9b0   :  { %943 = vmatprep.subr.bf16.mxu1 %v2978_v53 }
 0x9b3   :  { %944 = vmatpush1.bf16.msra.mxu1 %v839_v34 }
 0x9b4   :  { %945 = vmatprep.subr.bf16.mxu1 %v2978_v53 }
 0x9b7   :  { %946 = vmatpush1.bf16.msra.mxu1 %v888_v60 }
 0x9b8   :  { %947 = vmatprep.subr.bf16.mxu1 %v2978_v53 }
 0x9bb   :  { %948 = vmatpush1.bf16.msra.mxu1 %v895_v62  ;;  %v2846_v62 = vld [vmem:[%s3220_s10 + $0x34] ss:$8 sps:$4 sm:$0xff]  }
 0x9bc   :  { %949 = vmatprep.subr.bf16.mxu1 %v2978_v53  ;;  %v916_v7 = vpop.permute.xlu0 %915  ;;  %v921_v12 = vpop.permute.xlu1 %920 }
 0x9bf   :  { %950 = vmatpush1.bf16.msra.mxu1 %v900_v0 }
 0x9c0   :  { %951 = vmatprep.subr.bf16.mxu1 %v2978_v53 }
 0x9c3   :  { %952 = vmatpush1.bf16.msra.mxu1 %v908_v5 }
 0x9c6   :  { %968 = vmatmul.mubr.bf16.vlgmr.msra.gmra.mrb[12].mxu1 %v2834_v6 }
 0xa99   :  { %v969_v8 = vpop.f32.mrb[12].mxu1 }
 0xa9a   :  { %v3193_v9 = vadd.f32 %v969_v8, %v916_v7  ;;  %v971_v10 = vpop.f32.mrb[13].mxu1 }
 0xa9b   :  { %v972_v13 = vpop.f32.mrb[14].mxu1 }
 0xa9c   :  { %v3195_v14 = vadd.f32 %v972_v13, %v921_v12  ;;  %v974_v15 = vpop.f32.mrb[15].mxu1  ;;  %v977_v16 = vsel %vm976_vm15, %v3193_v9, 0.0  ;;  %v983_v17 = vmul.f32 %v3193_v9, %v3193_v9 }
 0xa9d   :  { %978 = vadd.xlane.f32.xlu0 %v977_v16 }
 0xa9e   :  { %v980_v18 = vsel %vm976_vm15, %v3195_v14, 0.0  ;;  %v985_v19 = vsel %vm976_vm15, %v983_v17, 0.0  ;;  %v984_v20 = vmul.f32 %v3195_v14, %v3195_v14 }
 0xa9f   :  { %981 = vadd.xlane.f32.xlu1 %v980_v18 }
 0xaa0   :  { %v988_v21 = vsel %vm976_vm15, %v984_v20, 0.0 }
 0xaa1   :  { %986 = vadd.xlane.f32.xlu0 %v985_v19 }
 0xaa5   :  { %989 = vadd.xlane.f32.xlu0 %v988_v21 }
 0xb2a   :  { %v979_v23 = vpop.xlane.xlu0 %978 }
 0xb2c   :  { %v982_v25 = vpop.xlane.xlu1 %981 }
 0xb2e   :  { %v987_v24 = vpop.xlane.xlu0 %986 }
 0xb2f   :  { %v993_v27 = vsel %vm523_vm13, %v979_v23, %v987_v24  ;;  %v1386_v23 = vld [vmem:[%s2535_s12] sm:$0xff]  ;;  %v1387_v24 = vld [vmem:[%s2535_s12 + $0x8] sm:$0xff] }
 0xb32   :  { %v990_v26 = vpop.xlane.xlu0 %989 }
 0xb33   :  { %v994_v28 = vsel %vm523_vm13, %v982_v25, %v990_v26  ;;  %v2580_v25 = vld.sshfl [vmem:[%s2528_s21] sm:$0x11 pattern:$0x76325410] }
 0xb34   :  { %v2763_v29 = vpack.c.bf16 %v994_v28, %v993_v27  ;;  %v1259_v26 = vcombine.high %v2580_v25, %v2580_v25  ;;  %v1261_v28 = vpack.i.b16 %v2580_v25, %v2580_v25 }
 0xb36   :  { %2764 = vmatprep.subr.bf16.mxu0 %v2763_v29  ;;  %v1268_v27 = vpack.i.b16 %v1259_v26, %v1259_v26 }
 0xb37   :  { %2766 = vmatpush3.bf16.msra.mxu0 %v2763_v29  ;;  %v2581_v29 = vld.sshfl [vmem:[%s2528_s21] sm:$0x22 pattern:$0x76325410] }
 0xb38   :  { %1192 = vmatprep.subr.bf16.mxu0 %v2837_v44 }
 0xb3a   :  { %2738 = vmatmul.mubr.msk.f32.vlgmr.msra.gmra.mrb[6].mxu0 %vm578_vm9, %v992_v30  ;;  %v1273_v30 = vrot.slane %v1268_v27, %v3101_v3 }
 0xb3b   :  { %1224 = vmatprep.mubr.bf16.mxu0 %v2978_v53  ;;  %1193 = vmatpush1.bf16.msra.mxu0 %v2835_v43 }
 0xb3c   :  { %1194 = vmatprep.subr.bf16.mxu0 %v2840_v52 }
 0xb3f   :  { %1195 = vmatpush1.bf16.msra.mxu0 %v2838_v51 }
 0xb40   :  { %1196 = vmatprep.subr.bf16.mxu0 %v2843_v59 }
 0xb43   :  { %1197 = vmatpush1.bf16.msra.mxu0 %v2841_v61 }
 0xb44   :  { %1198 = vmatprep.subr.bf16.mxu0 %v2846_v62 }
 0xb47   :  { %1199 = vmatpush1.bf16.msra.mxu0 %v2844_v1 }
 0xc0d   :  { %v2739_v31 = vpop.f32.mrb[6].mxu0 }
 0xc0e   :  { %v1077_v32 = vmul.f32 %v2739_v31, %v2739_v31  ;;  %v1067_v33 = vpop.f32.mrb[7].mxu0 }
 0xc0f   :  { %v1076_v35 = vmul.f32 %v1067_v33, %v1067_v33 }
 0xc10   :  { %1082 = vrot.lane.b32.xlu0 %v1077_v32, %s2968_s26  ;;  %v1266_v32 = vrot.slane %v1261_v28, %v3101_v3 }
 0xc11   :  { %1080 = vrot.lane.b32.xlu1 %v1076_v35, %s2968_s26 }
 0xc82   :  { %v1083_v34 = vpop.permute.xlu0 %1082 }
 0xc83   :  { %v1081_v36 = vpop.permute.xlu1 %1080  ;;  %v1087_v37 = vsub.f32 %v2739_v31, %v1083_v34 }
 0xc84   :  { %v1086_v38 = vsub.f32 %v1067_v33, %v1081_v36 }
 0xc85   :  { %v1091_v40 = vadd.f32 1e-05, %v1087_v37 }
 0xc86   :  { %v1090_v39 = vadd.f32 1e-05, %v1086_v38 }
 0xc88   :  { %2952 = vrsqrt.f32 %v1090_v39 }
 0xc89   :  { %2954 = vrsqrt.f32 %v1091_v40 }
 0xc92   :  { %v2953_v41 = vpop.eup %2952 }
 0xc93   :  { %1096 = vrot.lane.b32.xlu1 %v2953_v41, %s2980_s18  ;;  %v2955_v42 = vpop.eup %2954  ;;  %v1307_v41 = vpack.i.b16 %v2581_v29, %v2581_v29 }
 0xc97   :  { %1098 = vrot.lane.b32.xlu1 %v2955_v42, %s2980_s18 }
 0xd05   :  { %v1097_v46 = vpop.permute.xlu1 %1096 }
 0xd06   :  { %v1102_v47 = vmul.f32 %v1097_v46, %v1088_v45  ;;  %v1312_v45 = vrot.slane %v1307_v41, %v3105_v11 }
 0xd08   :  { %v1106_v50 = vmul.f32 %v1102_v47, %v1067_v33  ;;  %1112 = vperm.xlu0 %2827, %v1102_v47  }
 0xd09   :  { %v1099_v54 = vpop.permute.xlu1 %1098 }
 0xd0a   :  { %v1103_v55 = vmul.f32 %v1099_v54, %v1089_v48  ;;  %v1108_v56 = vsub.f32 %v1104_v49, %v1106_v50 }
 0xd0c   :  { %v1107_v58 = vmul.f32 %v2739_v31, %v1103_v55  ;;  %1124 = vperm.xlu0 %2827, %v1108_v56   ;;  %1117 = vperm.xlu1 %2826, %v1103_v55   ;;  %v1305_v31 = vcombine.high %v2581_v29, %v2581_v29 }
 0xd0e   :  { %v1109_v60 = vsub.f32 %v1105_v57, %v1107_v58  ;;  %v1314_v38 = vpack.i.b16 %v1305_v31, %v1305_v31 }
 0xd10   :  { %1129 = vperm.xlu1 %2826, %v1109_v60   ;;  %v1319_v44 = vrot.slane %v1314_v38, %v3105_v11 }
 0xd87   :  { %v1113_v2 = vpop.permute.xlu0 %1112 }
 0xd88   :  { %v1120_v4 = vmul.f32 %v1113_v2, %v3193_v9 }
 0xd8b   :  { %v1125_v0 = vpop.permute.xlu0 %1124  ;;  %v1118_v5 = vpop.permute.xlu1 %1117 }
 0xd8c   :  { %v1132_v6 = vadd.f32 %v1125_v0, %v1120_v4  ;;  %v1121_v7 = vmul.f32 %v1118_v5, %v3195_v14 }
 0xd8e   :  { %v1136_v10 = vmul.f32 0.01, %v1132_v6  ;;  %vm1134_vm2 = vcmp.gt.f32.partialorder %v1132_v6, 0.0 }
 0xd8f   :  { %v1130_v8 = vpop.permute.xlu1 %1129 }
 0xd90   :  { %v1133_v12 = vadd.f32 %v1130_v8, %v1121_v7  ;;  %v1138_v15 = vsel %vm1134_vm2, %v1132_v6, %v1136_v10  ;;  %vm2180_vm2 = vcmask 162816  }
 0xd92   :  { %vm1135_vm3 = vcmp.gt.f32.partialorder %v1133_v12, 0.0  ;;  %v1137_v13 = vmul.f32 0.01, %v1133_v12 }
 0xd94   :  { %v1139_v16 = vsel %vm1135_vm3, %v1133_v12, %v1137_v13  ;;  %vm2196_vm3 = vcmask 154624  }
 0xd95   :  { %v1140_v17 = vpack.c.bf16 %v1139_v16, %v1138_v15 }
 0xd97   :  { %2579 = vmatmul.mubr.msk.bf16.vlgmr.msra.gmra.mrb[12].mxu0 %vm976_vm15, %v1140_v17 }
 0xe6a   :  { %v1226_v18 = vpop.f32.mrb[12].mxu0 }
 0xe6b   :  { %v1228_v19 = vpop.f32.mrb[13].mxu0 }
 0xe6c   :  { %v1230_v20 = vpop.f32.mrb[14].mxu0 }
 0xe6d   :  { %v3241_v9 = vpack.c.bf16 %v1230_v20, %v1226_v18  ;;  %v1232_v21 = vpop.f32.mrb[15].mxu0 }
 0xe6e   :  { %v3243_v22 = vpack.c.bf16 %v1232_v21, %v1228_v19 }
 0xe6f   :  { %1239 = vrot.lane.b32.xlu0 %v3241_v9, %s2983_s14 }
 0xe70   :  { %1241 = vrot.lane.b32.xlu1 %v3243_v22, %s2983_s14  ;;  %s2545_s14 = sld [smem:[%s3584_s0 + %s3006_s1]]  }
 0xe73   :  { %1276 = vrot.lane.b32.xlu0 %v3241_v9, %s2982_s20 }
 0xe74   :  { %1278 = vrot.lane.b32.xlu1 %v3243_v22, %s2982_s20  ;;  %s2999_s20 = smov 20  }
 0xe75   :  { %s3269_s5 = sld [smem:[%s3584_s0 + %s2999_s20]]  }
 0xe77   :  { %1286 = vrot.lane.b32.xlu0 %v3241_v9, %s2998_s30 }
 0xe78   :  { %1288 = vrot.lane.b32.xlu1 %v3243_v22, %s2998_s30 }
 0xe7b   :  { %1322 = vrot.lane.b32.xlu0 %v3241_v9, %s2968_s26  ;;  %v2849_v14 = vld [vmem:[%s3269_s5 + $0x4] ss:$8 sps:$4 sm:$0xff]  }
 0xe7c   :  { %1324 = vrot.lane.b32.xlu1 %v3243_v22, %s2968_s26  ;;  %2587 = vmatprep.mubr.msk.bf16.mxu1 %vm578_vm9, %v2849_v14 }
 0xe7f   :  { %1336 = vrot.lane.b32.xlu0 %v3243_v22, %s2980_s18 }
 0xe80   :  { %1334 = vrot.lane.b32.xlu1 %v3241_v9, %s2980_s18 }
 0xe83   :  { %1349 = vrot.lane.b32.xlu0 %v3243_v22, %s3000_s6 }
 0xe84   :  { %1347 = vrot.lane.b32.xlu1 %v3241_v9, %s3000_s6 }
 0xe87   :  { %1360 = vrot.lane.b32.xlu0 %v3241_v9, %s2971_s8 }
 0xe88   :  { %1362 = vrot.lane.b32.xlu1 %v3243_v22, %s2971_s8  ;;  %s3004_s8 = smov 26  }
 0xe89   :  { %s2540_s22 = sld [smem:[%s3584_s0 + %s3004_s8]]  }
 0xe8a   :  { %s2529_s8 = sld [smem:[%s3584_s0 + %s2998_s30]]  }
 0xe8b   :  { %1373 = vrot.lane.b32.xlu0 %v3243_v22, %s3002_s15 }
 0xe8c   :  { %1371 = vrot.lane.b32.xlu1 %v3241_v9, %s3002_s15 }
 0xe8f   :  { %1390 = vperm.xlu0 %2827, %v1386_v23   ;;  %v1469_v38 = vld [vmem:[%s2540_s22] sm:$0xff] }
 0xe90   :  { %1395 = vperm.xlu1 %2826, %v1387_v24   ;;  %2744 = vmatprep.mubr.msk.f32.mxu0 %vm578_vm9, %v1469_v38  ;;  %v2903_v38 = vld [vmem:[%s3345_s29 + $0x108] ss:$16 sps:$4 sm:$0xff]  }
 0xee1   :  { %v1240_v33 = vpop.permute.xlu0 %1239 }
 0xee2   :  { %v1248_v35 = vsel %vm1243_vm0, 0, %v1240_v33  ;;  %v1242_v34 = vpop.permute.xlu1 %1241 }
 0xee3   :  { %v1244_v36 = vsel %vm1243_vm0, %v1240_v33, %v1242_v34  ;;  %v1274_v39 = vmul.bf16 %v1266_v32, %v1248_v35  ;;  %vm2655_vm0 = vmneg %vm2180_vm2 }
 0xee4   :  { %v1275_v37 = vmul.bf16 %v1273_v30, %v1244_v36 }
 0xee5   :  { %v1277_v40 = vpop.permute.xlu0 %1276 }
 0xee6   :  { %1410 = vmatprep.subr.bf16.mxu1 %v1275_v37  ;;  %v1279_v42 = vpop.permute.xlu1 %1278 }
 0xee7   :  { %1411 = vmatpush1.bf16.msra.mxu1 %v1274_v39  ;;  %v1281_v43 = vsel %vm578_vm9, %v1277_v40, %v1279_v42 }
 0xee8   :  { %1412 = vmatprep.subr.bf16.mxu1 %v1281_v43 }
 0xee9   :  { %v1287_v46 = vpop.permute.xlu0 %1286 }
 0xeea   :  { %v1294_v47 = vsel %vm530_vm14, 0, %v1287_v46  ;;  %v1289_v48 = vpop.permute.xlu1 %1288 }
 0xeeb   :  { %v1291_v49 = vsel %vm530_vm14, %v1287_v46, %v1289_v48  ;;  %2585 = vmatpush1.bf16.msk.msra.mxu1 %vm2584_vm4, %v1277_v40  ;;  %v1320_v51 = vmul.bf16 %v1312_v45, %v1294_v47  ;;  %v1470_v46 = vld [vmem:[%s2540_s22 + $0x8] sm:$0xff]  ;;  %vm2308_vm4 = vcmask 891904  }
 0xeec   :  { %v1321_v50 = vmul.bf16 %v1319_v44, %v1291_v49 }
 0xeed   :  { %v1323_v52 = vpop.permute.xlu0 %1322 }
 0xeee   :  { %v1330_v54 = vsel %vm523_vm13, 0, %v1323_v52  ;;  %1414 = vmatprep.subr.bf16.mxu1 %v1321_v50  ;;  %v1325_v55 = vpop.permute.xlu1 %1324 }
 0xeef   :  { %v1327_v56 = vsel %vm523_vm13, %v1323_v52, %v1325_v55  ;;  %1415 = vmatpush1.bf16.msra.mxu1 %v1320_v51  ;;  %v1332_v58 = vmul.bf16 %v1330_v54, %v1266_v32 }
 0xef0   :  { %v1333_v57 = vmul.bf16 %v1327_v56, %v1273_v30 }
 0xef1   :  { %v1337_v59 = vpop.permute.xlu0 %1336 }
 0xef2   :  { %1416 = vmatprep.subr.bf16.mxu1 %v1333_v57  ;;  %v1335_v60 = vpop.permute.xlu1 %1334  ;;  %v1343_v61 = vsel %vm1338_vm6, %v1337_v59, 0 }
 0xef3   :  { %1417 = vmatpush1.bf16.msra.mxu1 %v1332_v58  ;;  %v1346_v1 = vmul.bf16 %v1343_v61, %v1319_v44  ;;  %v1339_v2 = vsel %vm1338_vm6, %v1335_v60, %v1337_v59  ;;  %v2852_v60 = vld [vmem:[%s3345_s29] ss:$16 sps:$4 sm:$0xff]   ;;  %v2854_v61 = vld [vmem:[%s3345_s29 + $0x4] ss:$16 sps:$4 sm:$0xff]  }
 0xef4   :  { %1418 = vmatprep.subr.bf16.mxu1 %v3243_v22  ;;  %v1345_v5 = vmul.bf16 %v1339_v2, %v1312_v45  ;;  %v2858_v2 = vld [vmem:[%s3345_s29 + $0x20] ss:$16 sps:$4 sm:$0xff]  }
 0xef5   :  { %v1350_v62 = vpop.permute.xlu0 %1349 }
 0xef6   :  { %v1348_v4 = vpop.permute.xlu1 %1347  ;;  %v1356_v0 = vsel %vm1351_vm7, %v1350_v62, 0 }
 0xef7   :  { %1419 = vmatpush1.bf16.msra.mxu1 %v3241_v9  ;;  %v1359_v7 = vmul.bf16 %v1356_v0, %v1273_v30  ;;  %v1352_v8 = vsel %vm1351_vm7, %v1348_v4, %v1350_v62  ;;  %v2851_v9 = vld [vmem:[%s3269_s5] ss:$8 sps:$4 sm:$0xff]   ;;  %v2860_v4 = vld [vmem:[%s3345_s29 + $0x24] ss:$16 sps:$4 sm:$0xff]   ;;  %vm2348_vm7 = vcmask 875520  }
 0xef8   :  { %1420 = vmatprep.subr.bf16.mxu1 %v1346_v1  ;;  %v1358_v12 = vmul.bf16 %v1352_v8, %v1266_v32  ;;  %v2855_v62 = vld [vmem:[%s3345_s29 + $0x8] ss:$16 sps:$4 sm:$0xff]   ;;  %v2857_v1 = vld [vmem:[%s3345_s29 + $0xc] ss:$16 sps:$4 sm:$0xff]  }
 0xef9   :  { %v1361_v6 = vpop.permute.xlu0 %1360  ;;  %v2861_v0 = vld [vmem:[%s3345_s29 + $0x28] ss:$16 sps:$4 sm:$0xff]   ;;  %v2869_v8 = vld [vmem:[%s3345_s29 + $0x4c] ss:$16 sps:$4 sm:$0xff]  }
 0xefa   :  { %v1363_v10 = vpop.permute.xlu1 %1362 }
 0xefb   :  { %1421 = vmatpush1.bf16.msra.mxu1 %v1345_v5  ;;  %v1365_v17 = vsel %vm1364_vm10, %v1361_v6, %v1363_v10  ;;  %v2863_v5 = vld [vmem:[%s3345_s29 + $0x2c] ss:$16 sps:$4 sm:$0xff]   ;;  %v2866_v6 = vld [vmem:[%s3345_s29 + $0x44] ss:$16 sps:$4 sm:$0xff]  }
 0xefc   :  { %1422 = vmatprep.subr.bf16.mxu1 %v1359_v7  ;;  %v2864_v7 = vld [vmem:[%s3345_s29 + $0x40] ss:$16 sps:$4 sm:$0xff]  }
 0xefd   :  { %v1374_v13 = vpop.permute.xlu0 %1373 }
 0xefe   :  { %v1380_v15 = vsel %vm1375_vm8, %v1374_v13, 0  ;;  %v1372_v16 = vpop.permute.xlu1 %1371 }
 0xeff   :  { %1423 = vmatpush1.bf16.msra.mxu1 %v1358_v12  ;;  %v1383_v18 = vmul.bf16 %v1380_v15, %v1319_v44  ;;  %v1376_v19 = vsel %vm1375_vm8, %v1372_v16, %v1374_v13  ;;  %v2872_v12 = vld [vmem:[%s3345_s29 + $0x64] ss:$16 sps:$4 sm:$0xff]   ;;  %v2875_v13 = vld [vmem:[%s3345_s29 + $0x6c] ss:$16 sps:$4 sm:$0xff]   ;;  %v2870_v15 = vld [vmem:[%s3345_s29 + $0x60] ss:$16 sps:$4 sm:$0xff]  }
 0xf00   :  { %2586 = vmatprep.subr.msk.bf16.mxu1 %vm1364_vm10, %v1363_v10  ;;  %v1382_v20 = vmul.bf16 %v1376_v19, %v1312_v45  ;;  %v2867_v10 = vld [vmem:[%s3345_s29 + $0x48] ss:$16 sps:$4 sm:$0xff]   ;;  %v2876_v19 = vld [vmem:[%s3345_s29 + $0x80] ss:$16 sps:$4 sm:$0xff]   ;;  %vm2354_vm8 = vcmask 1006592   ;;  %vm2504_vm10 = vcmask 1043458  }
 0xf01   :  { %v2873_v16 = vld [vmem:[%s3345_s29 + $0x68] ss:$16 sps:$4 sm:$0xff]  }
 0xf03   :  { %1425 = vmatpush1.bf16.msra.mxu1 %v1365_v17  ;;  %v2878_v17 = vld [vmem:[%s3345_s29 + $0x84] ss:$16 sps:$4 sm:$0xff]  }
 0xf04   :  { %1426 = vmatprep.subr.bf16.mxu1 %v1383_v18  ;;  %v2881_v18 = vld [vmem:[%s3345_s29 + $0x8c] ss:$16 sps:$4 sm:$0xff]  }
 0xf07   :  { %1427 = vmatpush1.bf16.msra.mxu1 %v1382_v20  ;;  %v2879_v20 = vld [vmem:[%s3345_s29 + $0x88] ss:$16 sps:$4 sm:$0xff]  }
 0xf08   :  { %2057 = vmatprep.subr.bf16.mxu1 %v2857_v1 }
 0xf0a   :  { %1443 = vmatmul.mubr.bf16.vlgmr.msra.gmra.mrb[16].mxu1 %v2851_v9  ;;  %v2884_v9 = vld [vmem:[%s3345_s29 + $0xa4] ss:$16 sps:$4 sm:$0xff]  }
 0xf0b   :  { %2058 = vmatpush1.bf16.msra.mxu1 %v2855_v62  ;;  %v2927_v62 = vld [vmem:[%s3345_s29 + $0x188] ss:$16 sps:$4 sm:$0xff]  }
 0xf0c   :  { %2059 = vmatprep.subr.bf16.mxu1 %v2863_v5  ;;  %v2932_v5 = vld [vmem:[%s3345_s29 + $0x1a4] ss:$16 sps:$4 sm:$0xff]  }
 0xf0e   :  { %v1391_v21 = vpop.permute.xlu0 %1390 }
 0xf0f   :  { %v1396_v24 = vpop.permute.xlu1 %1395  ;;  %2060 = vmatpush1.bf16.msra.mxu1 %v2861_v0 }
 0xf10   :  { %2061 = vmatprep.subr.bf16.mxu1 %v2869_v8  ;;  %v2930_v8 = vld [vmem:[%s3345_s29 + $0x1a0] ss:$16 sps:$4 sm:$0xff]  }
 0xf13   :  { %2062 = vmatpush1.bf16.msra.mxu1 %v2867_v10  ;;  %v2933_v10 = vld [vmem:[%s3345_s29 + $0x1a8] ss:$16 sps:$4 sm:$0xff]  }
 0xf14   :  { %2063 = vmatprep.subr.bf16.mxu1 %v2875_v13  ;;  %v2938_v13 = vld [vmem:[%s3345_s29 + $0x1c4] ss:$16 sps:$4 sm:$0xff]  }
 0xf17   :  { %2064 = vmatpush1.bf16.msra.mxu1 %v2873_v16  ;;  %v2936_v16 = vld [vmem:[%s3345_s29 + $0x1c0] ss:$16 sps:$4 sm:$0xff]  }
 0xf18   :  { %2065 = vmatprep.subr.bf16.mxu1 %v2881_v18  ;;  %v2947_v18 = vld [vmem:[%s3345_s29 + $0x1ec] ss:$16 sps:$4 sm:$0xff]  }
 0xf1b   :  { %2066 = vmatpush1.bf16.msra.mxu1 %v2879_v20  ;;  %v2945_v20 = vld [vmem:[%s3345_s29 + $0x1e8] ss:$16 sps:$4 sm:$0xff]  }
 0xfdd   :  { %v1444_v22 = vpop.f32.mrb[16].mxu1 }
 0xfde   :  { %v3303_v14 = vadd.f32 %v1444_v22, %v1391_v21  ;;  %v1446_v23 = vpop.f32.mrb[17].mxu1  ;;  %v2882_v22 = vld [vmem:[%s3345_s29 + $0xa0] ss:$16 sps:$4 sm:$0xff]  }
 0xfdf   :  { %v3305_v25 = vadd.f32 %v1446_v23, %v1391_v21  ;;  %v1448_v26 = vpop.f32.mrb[18].mxu1  ;;  %v2887_v21 = vld [vmem:[%s3345_s29 + $0xac] ss:$16 sps:$4 sm:$0xff]   ;;  %v2885_v23 = vld [vmem:[%s3345_s29 + $0xa8] ss:$16 sps:$4 sm:$0xff]  }
 0xfe0   :  { %v3307_v27 = vadd.f32 %v1448_v26, %v1396_v24  ;;  %v1450_v28 = vpop.f32.mrb[19].mxu1  ;;  %v1459_v31 = vmul.f32 %v3303_v14, %v3303_v14  ;;  %2067 = vmatprep.subr.bf16.mxu1 %v2887_v21  ;;  %v2893_v26 = vld [vmem:[%s3345_s29 + $0xcc] ss:$16 sps:$4 sm:$0xff]  }
 0xfe1   :  { %v3309_v29 = vadd.f32 %v1450_v28, %v1396_v24  ;;  %v1453_v30 = vadd.f32 %v3305_v25, %v3303_v14  ;;  %v1460_v32 = vmul.f32 %v3305_v25, %v3305_v25  ;;  %v2890_v24 = vld [vmem:[%s3345_s29 + $0xc4] ss:$16 sps:$4 sm:$0xff]   ;;  %v2888_v28 = vld [vmem:[%s3345_s29 + $0xc0] ss:$16 sps:$4 sm:$0xff]   ;;  %2068 = vmatpush1.bf16.msra.mxu1 %v2885_v23 }
 0xfe2   :  { %v1461_v34 = vmul.f32 %v3307_v27, %v3307_v27  ;;  %2069 = vmatprep.subr.bf16.mxu1 %v2893_v26 }
 0xfe3   :  { %1454 = vadd.xlane.f32.xlu0 %v1453_v30  ;;  %v1456_v33 = vadd.f32 %v3309_v29, %v3307_v27  ;;  %v1463_v35 = vadd.f32 %v1460_v32, %v1459_v31  ;;  %v1462_v36 = vmul.f32 %v3309_v29, %v3309_v29  ;;  %v2891_v30 = vld [vmem:[%s3345_s29 + $0xc8] ss:$16 sps:$4 sm:$0xff]   ;;  %v2896_v31 = vld [vmem:[%s3345_s29 + $0xe4] ss:$16 sps:$4 sm:$0xff]   ;;  %v2899_v32 = vld [vmem:[%s3345_s29 + $0xec] ss:$16 sps:$4 sm:$0xff]  }
 0xfe5   :  { %1457 = vadd.xlane.f32.xlu1 %v1456_v33  ;;  %v1466_v37 = vadd.f32 %v1462_v36, %v1461_v34  ;;  %v2894_v33 = vld [vmem:[%s3345_s29 + $0xe0] ss:$16 sps:$4 sm:$0xff]   ;;  %2070 = vmatpush1.bf16.msra.mxu1 %v2891_v30  ;;  %v2902_v34 = vld [vmem:[%s3345_s29 + $0x104] ss:$16 sps:$4 sm:$0xff]  }
 0xfe6   :  { %2071 = vmatprep.subr.bf16.mxu1 %v2899_v32  ;;  %v2900_v36 = vld [vmem:[%s3345_s29 + $0x100] ss:$16 sps:$4 sm:$0xff]  }
 0xfe7   :  { %1464 = vadd.xlane.f32.xlu0 %v1463_v35  ;;  %v2897_v35 = vld [vmem:[%s3345_s29 + $0xe8] ss:$16 sps:$4 sm:$0xff]  }
 0xfe9   :  { %2072 = vmatpush1.bf16.msra.mxu1 %v2897_v35 }
 0xfeb   :  { %1467 = vadd.xlane.f32.xlu0 %v1466_v37  ;;  %v2905_v37 = vld [vmem:[%s3345_s29 + $0x10c] ss:$16 sps:$4 sm:$0xff]  }
 0xfec   :  { %2073 = vmatprep.subr.bf16.mxu1 %v2905_v37 }
 0xfed   :  { %2074 = vmatpush1.bf16.msra.mxu1 %v2903_v38 }
0x1070   :  { %v1455_v39 = vpop.xlane.xlu0 %1454 }
0x1072   :  { %v1458_v41 = vpop.xlane.xlu1 %1457 }
0x1074   :  { %v1465_v40 = vpop.xlane.xlu0 %1464 }
0x1075   :  { %v1471_v43 = vsel %vm523_vm13, %v1455_v39, %v1465_v40  ;;  %v2908_v39 = vld [vmem:[%s3345_s29 + $0x124] ss:$16 sps:$4 sm:$0xff]   ;;  %v2911_v40 = vld [vmem:[%s3345_s29 + $0x12c] ss:$16 sps:$4 sm:$0xff]  }
0x1076   :  { %2075 = vmatprep.subr.bf16.mxu1 %v2911_v40 }
0x1078   :  { %v1468_v42 = vpop.xlane.xlu0 %1467 }
0x1079   :  { %v1472_v44 = vsel %vm523_vm13, %v1458_v41, %v1468_v42  ;;  %v2906_v41 = vld [vmem:[%s3345_s29 + $0x120] ss:$16 sps:$4 sm:$0xff]   ;;  %v2909_v42 = vld [vmem:[%s3345_s29 + $0x128] ss:$16 sps:$4 sm:$0xff]  }
0x107a   :  { %v2767_v45 = vpack.c.bf16 %v1472_v44, %v1471_v43  ;;  %v2914_v43 = vld [vmem:[%s3345_s29 + $0x144] ss:$16 sps:$4 sm:$0xff]   ;;  %v2917_v44 = vld [vmem:[%s3345_s29 + $0x14c] ss:$16 sps:$4 sm:$0xff]   ;;  %2076 = vmatpush1.bf16.msra.mxu1 %v2909_v42 }
0x107b   :  { %2077 = vmatprep.subr.bf16.mxu1 %v2917_v44 }
0x107c   :  { %2768 = vmatprep.subr.bf16.mxu0 %v2767_v45 }
0x107d   :  { %2770 = vmatpush3.bf16.msra.mxu0 %v2767_v45  ;;  %v2912_v45 = vld [vmem:[%s3345_s29 + $0x140] ss:$16 sps:$4 sm:$0xff]  }
0x107e   :  { %2014 = vmatprep.subr.bf16.mxu0 %v2854_v61  ;;  %v2924_v61 = vld [vmem:[%s3345_s29 + $0x180] ss:$16 sps:$4 sm:$0xff]  }
0x1080   :  { %2745 = vmatmul.mubr.msk.f32.vlgmr.msra.gmra.mrb[16].mxu0 %vm578_vm9, %v1470_v46  ;;  %v2915_v46 = vld [vmem:[%s3345_s29 + $0x148] ss:$16 sps:$4 sm:$0xff]  }
0x1081   :  { %2015 = vmatpush1.bf16.msra.mxu0 %v2852_v60  ;;  %2078 = vmatpush1.bf16.msra.mxu1 %v2915_v46  ;;  %v1582_v60 = vld [vmem:[%s2546_s11] sm:$0xff] }
0x1082   :  { %2016 = vmatprep.subr.bf16.mxu0 %v2860_v4 }
0x1085   :  { %2017 = vmatpush1.bf16.msra.mxu0 %v2858_v2 }
0x1086   :  { %2018 = vmatprep.subr.bf16.mxu0 %v2866_v6  ;;  %v2935_v6 = vld [vmem:[%s3345_s29 + $0x1ac] ss:$16 sps:$4 sm:$0xff]  }
0x1089   :  { %2019 = vmatpush1.bf16.msra.mxu0 %v2864_v7  ;;  %v1583_v7 = vld [vmem:[%s2546_s11 + $0x8] sm:$0xff] }
0x108a   :  { %2020 = vmatprep.subr.bf16.mxu0 %v2872_v12 }
0x108d   :  { %2021 = vmatpush1.bf16.msra.mxu0 %v2870_v15  ;;  %v2941_v15 = vld [vmem:[%s3345_s29 + $0x1cc] ss:$16 sps:$4 sm:$0xff]  }
0x108e   :  { %2022 = vmatprep.subr.bf16.mxu0 %v2878_v17  ;;  %v2939_v17 = vld [vmem:[%s3345_s29 + $0x1c8] ss:$16 sps:$4 sm:$0xff]  }
0x1091   :  { %2023 = vmatpush1.bf16.msra.mxu0 %v2876_v19  ;;  %v2942_v19 = vld [vmem:[%s3345_s29 + $0x1e0] ss:$16 sps:$4 sm:$0xff]  }
0x1092   :  { %2024 = vmatprep.subr.bf16.mxu0 %v2884_v9 }
0x1095   :  { %2025 = vmatpush1.bf16.msra.mxu0 %v2882_v22 }
0x1096   :  { %2026 = vmatprep.subr.bf16.mxu0 %v2890_v24 }
0x1099   :  { %2027 = vmatpush1.bf16.msra.mxu0 %v2888_v28 }
0x109a   :  { %2028 = vmatprep.subr.bf16.mxu0 %v2896_v31 }
0x109d   :  { %2029 = vmatpush1.bf16.msra.mxu0 %v2894_v33 }
0x109e   :  { %2030 = vmatprep.subr.bf16.mxu0 %v2902_v34 }
0x10a1   :  { %2031 = vmatpush1.bf16.msra.mxu0 %v2900_v36 }
0x10a2   :  { %2032 = vmatprep.subr.bf16.mxu0 %v2908_v39 }
0x10a5   :  { %2033 = vmatpush1.bf16.msra.mxu0 %v2906_v41 }
0x10a6   :  { %2034 = vmatprep.subr.bf16.mxu0 %v2914_v43 }
0x10a9   :  { %2035 = vmatpush1.bf16.msra.mxu0 %v2912_v45 }
0x1153   :  { %v3330_v47 = vpop.f32.mrb[16].mxu0 }
0x1154   :  { %v1555_v48 = vmul.f32 %v3330_v47, %v3330_v47  ;;  %v3334_v49 = vpop.f32.mrb[17].mxu0 }
0x1155   :  { %v1554_v50 = vmul.f32 %v3334_v49, %v3334_v49 }
0x1156   :  { %1560 = vrot.lane.b32.xlu0 %v1555_v48, %s2968_s26  ;;  %v2920_v48 = vld [vmem:[%s3345_s29 + $0x164] ss:$16 sps:$4 sm:$0xff]  }
0x1157   :  { %1558 = vrot.lane.b32.xlu1 %v1554_v50, %s2968_s26  ;;  %v2923_v50 = vld [vmem:[%s3345_s29 + $0x16c] ss:$16 sps:$4 sm:$0xff]   ;;  %2036 = vmatprep.subr.bf16.mxu0 %v2920_v48 }
0x1158   :  { %2079 = vmatprep.subr.bf16.mxu1 %v2923_v50 }
0x11c8   :  { %v1561_v51 = vpop.permute.xlu0 %1560 }
0x11c9   :  { %v1559_v52 = vpop.permute.xlu1 %1558  ;;  %v1565_v54 = vsub.f32 %v3330_v47, %v1561_v51  ;;  %v2918_v51 = vld [vmem:[%s3345_s29 + $0x160] ss:$16 sps:$4 sm:$0xff]  }
0x11ca   :  { %v1564_v55 = vsub.f32 %v3334_v49, %v1559_v52  ;;  %v2921_v52 = vld [vmem:[%s3345_s29 + $0x168] ss:$16 sps:$4 sm:$0xff]   ;;  %2037 = vmatpush1.bf16.msra.mxu0 %v2918_v51 }
0x11cb   :  { %v1569_v57 = vadd.f32 1e-05, %v1565_v54  ;;  %2080 = vmatpush1.bf16.msra.mxu1 %v2921_v52  ;;  %v1566_v54 = vld [vmem:[%s2545_s14] sm:$0xff] }
0x11cc   :  { %v1568_v56 = vadd.f32 1e-05, %v1564_v55 }
0x11ce   :  { %2956 = vrsqrt.f32 %v1568_v56 }
0x11cf   :  { %2958 = vrsqrt.f32 %v1569_v57  ;;  %v1567_v57 = vld [vmem:[%s2545_s14 + $0x8] sm:$0xff] }
0x11d8   :  { %v2957_v58 = vpop.eup %2956 }
0x11d9   :  { %1574 = vrot.lane.b32.xlu1 %v2957_v58, %s2980_s18  ;;  %v2959_v59 = vpop.eup %2958  ;;  %v2926_v58 = vld [vmem:[%s3345_s29 + $0x184] ss:$16 sps:$4 sm:$0xff]  }
0x11da   :  { %2038 = vmatprep.subr.bf16.mxu0 %v2926_v58 }
0x11db   :  { %2039 = vmatpush1.bf16.msra.mxu0 %v2924_v61 }
0x11dc   :  { %2040 = vmatprep.subr.bf16.mxu0 %v2932_v5 }
0x11dd   :  { %1576 = vrot.lane.b32.xlu1 %v2959_v59, %s2980_s18  ;;  %v2929_v59 = vld [vmem:[%s3345_s29 + $0x18c] ss:$16 sps:$4 sm:$0xff]  }
0x11de   :  { %2081 = vmatprep.subr.bf16.mxu1 %v2929_v59 }
0x11df   :  { %2082 = vmatpush1.bf16.msra.mxu1 %v2927_v62  ;;  %2041 = vmatpush1.bf16.msra.mxu0 %v2930_v8 }
0x11e0   :  { %2083 = vmatprep.subr.bf16.mxu1 %v2935_v6  ;;  %2042 = vmatprep.subr.bf16.mxu0 %v2938_v13  ;;  %v2123_v6 = vld [vmem:[%s2529_s8] sm:$0x55] }
0x11e3   :  { %2084 = vmatpush1.bf16.msra.mxu1 %v2933_v10  ;;  %2043 = vmatpush1.bf16.msra.mxu0 %v2936_v16 }
0x11e4   :  { %2085 = vmatprep.subr.bf16.mxu1 %v2941_v15 }
0x11e7   :  { %2086 = vmatpush1.bf16.msra.mxu1 %v2939_v17  ;;  %v2206_v17 = vld [vmem:[%s2529_s8] sm:$0xaa] }
0x11e8   :  { %2087 = vmatprep.subr.bf16.mxu1 %v2947_v18 }
0x11eb   :  { %2088 = vmatpush1.bf16.msra.mxu1 %v2945_v20  ;;  %v2208_v20 = vcombine.high %v2206_v17, %v2206_v17 }
0x124b   :  { %v1575_v55 = vpop.permute.xlu1 %1574 }
0x124c   :  { %v1580_v56 = vmul.f32 %v1575_v55, %v1566_v54 }
0x124e   :  { %v1584_v1 = vmul.f32 %v1580_v56, %v3334_v49  ;;  %1590 = vperm.xlu0 %2827, %v1580_v56   ;;  %v3010_v56 = vmov 1966171168  }
0x124f   :  { %v1577_v2 = vpop.permute.xlu1 %1576 }
0x1250   :  { %v1581_v4 = vmul.f32 %v1577_v2, %v1567_v57  ;;  %v1586_v0 = vsub.f32 %v1582_v60, %v1584_v1  ;;  %v2379_v57 = vunpack.c.l.s4 %v3010_v56 }
0x1252   :  { %v1585_v12 = vmul.f32 %v3330_v47, %v1581_v4  ;;  %1604 = vperm.xlu0 %2827, %v1586_v0   ;;  %1595 = vperm.xlu1 %2826, %v1581_v4   ;;  %v2944_v47 = vld [vmem:[%s3345_s29 + $0x1e4] ss:$16 sps:$4 sm:$0xff]   ;;  %v2380_v58 = vunpack.c.0.s8 %v2379_v57  ;;  %v3013_v4 = vmov 1983009808  }
0x1253   :  { %2044 = vmatprep.subr.bf16.mxu0 %v2944_v47  ;;  %v2127_v0 = vunpack.c.l.s4 %v3013_v4 }
0x1254   :  { %v1587_v49 = vsub.f32 %v1583_v7, %v1585_v12  ;;  %2045 = vmatpush1.bf16.msra.mxu0 %v2942_v19  ;;  %v2383_v61 = vsub.s32 %v2380_v58, %v3098_v63  ;;  %v2125_v7 = vcombine.high %v2123_v6, %v2123_v6 }
0x1255   :  { %v2128_v5 = vunpack.c.0.s8 %v2127_v0 }
0x1256   :  { %1609 = vperm.xlu1 %2826, %v1587_v49  }
0x1257   :  { %v3499_v8 = vsub.s32 %v2128_v5, %v3098_v63 }
0x1259   :  { %v2139_v10 = vrot.slane %v2125_v7, %v3499_v8  ;;  %v2132_v47 = vrot.slane %v2123_v6, %v3499_v8 }
0x125b   :  { %v2141_v12 = vcombine.high %v2139_v10, %v2139_v10 }
0x125d   :  { %v2164_v49 = vpack.i.b16 %v2141_v12, %v2141_v12 }
0x125f   :  { %v3503_v16 = vrot.slane %v2164_v49, %v3101_v3 }
0x12cd   :  { %v1591_v9 = vpop.permute.xlu0 %1590 }
0x12ce   :  { %v1598_v21 = vmul.f32 %v1591_v9, %v3303_v14  ;;  %v1599_v22 = vmul.f32 %v1591_v9, %v3305_v25 }
0x12d1   :  { %v1605_v23 = vpop.permute.xlu0 %1604  ;;  %v1596_v24 = vpop.permute.xlu1 %1595 }
0x12d2   :  { %v1612_v26 = vadd.f32 %v1605_v23, %v1598_v21  ;;  %v1613_v28 = vadd.f32 %v1605_v23, %v1599_v22  ;;  %v1600_v30 = vmul.f32 %v1596_v24, %v3307_v27  ;;  %v1601_v31 = vmul.f32 %v1596_v24, %v3309_v29 }
0x12d3   :  { %v2140_v21 = vcombine.high %v2132_v47, %v2132_v47  ;;  %v2222_v23 = vrot.slane %v2208_v20, %v3499_v8 }
0x12d4   :  { %v1620_v33 = vmul.f32 0.01, %v1612_v26  ;;  %v1621_v35 = vmul.f32 0.01, %v1613_v28  ;;  %vm1616_vm1 = vcmp.gt.f32.partialorder %v1612_v26, 0.0  ;;  %vm1617_vm11 = vcmp.gt.f32.partialorder %v1613_v28, 0.0 }
0x12d5   :  { %v1610_v32 = vpop.permute.xlu1 %1609  ;;  %v2150_v24 = vpack.i.b16 %v2140_v21, %v2140_v21 }
0x12d6   :  { %v1614_v34 = vadd.f32 %v1610_v32, %v1600_v30  ;;  %v1615_v36 = vadd.f32 %v1610_v32, %v1601_v31  ;;  %v1624_v25 = vsel %vm1616_vm1, %v1612_v26, %v1620_v33  ;;  %v1625_v39 = vsel %vm1617_vm11, %v1613_v28, %v1621_v35  ;;  %vm2505_vm1 = vmor %vm2504_vm10, %vm424_vm5 }
0x12d7   :  { %v2157_v26 = vpack.i.b16 %v2139_v10, %v2139_v10  ;;  %v2143_v28 = vpack.i.b16 %v2132_v47, %v2132_v47  ;;  %v2215_v30 = vrot.slane %v2206_v17, %v3499_v8  ;;  %v2224_v33 = vcombine.high %v2222_v23, %v2222_v23 }
0x12d8   :  { %vm1618_vm12 = vcmp.gt.f32.partialorder %v1614_v34, 0.0  ;;  %vm1619_vm15 = vcmp.gt.f32.partialorder %v1615_v36, 0.0  ;;  %v1622_v14 = vmul.f32 0.01, %v1614_v34  ;;  %v1623_v37 = vmul.f32 0.01, %v1615_v36 }
0x12d9   :  { %v3510_v35 = vrot.slane %v2150_v24, %v3101_v3  ;;  %vm2506_vm11 = vcmask 1045508  }
0x12da   :  { %v1626_v38 = vsel %vm1618_vm12, %v1614_v34, %v1622_v14  ;;  %v1627_v40 = vsel %vm1619_vm15, %v1615_v36, %v1623_v37  ;;  %v3513_v34 = vrot.slane %v2157_v26, %v3101_v3  ;;  %v2223_v36 = vcombine.high %v2215_v30, %v2215_v30  ;;  %vm2507_vm12 = vmor %vm2506_vm11, %vm2505_vm1 }
0x12db   :  { %v1628_v41 = vpack.c.bf16 %v1626_v38, %v1624_v25  ;;  %v1629_v42 = vpack.c.bf16 %v1627_v40, %v1625_v39  ;;  %v3516_v14 = vrot.slane %v2143_v28, %v3101_v3  ;;  %v2247_v39 = vpack.i.b16 %v2224_v33, %v2224_v33 }
0x12dc   :  { %v2240_v3 = vpack.i.b16 %v2222_v23, %v2222_v23  ;;  %vm2508_vm15 = vcmask 130054  }
0x12dd   :  { %2046 = vmatprep.mubr.bf16.mxu0 %v1629_v42  ;;  %2089 = vmatprep.mubr.bf16.mxu1 %v1629_v42 }
0x12de   :  { %2047 = vmatmul.mubr.bf16.vlgmr.msra.gmra.mrb[20].mxu0 %v1628_v41  ;;  %2090 = vmatmul.mubr.bf16.vlgmr.msra.gmra.mrb[20].mxu1 %v1628_v41  ;;  %v3533_v58 = vrot.slane %v2240_v3, %v3105_v11 }
0x13b1   :  { %v2048_v27 = vpop.f32.mrb[20].mxu0  ;;  %v2091_v29 = vpop.f32.mrb[20].mxu1 }
0x13b2   :  { %v2050_v43 = vpop.f32.mrb[21].mxu0  ;;  %v2093_v44 = vpop.f32.mrb[21].mxu1 }
0x13b3   :  { %v2052_v45 = vpop.f32.mrb[22].mxu0  ;;  %v2095_v46 = vpop.f32.mrb[22].mxu1 }
0x13b4   :  { %v3425_v48 = vpack.c.bf16 %v2052_v45, %v2048_v27  ;;  %v3427_v50 = vpack.c.bf16 %v2095_v46, %v2091_v29  ;;  %v2054_v51 = vpop.f32.mrb[23].mxu0  ;;  %v2097_v52 = vpop.f32.mrb[23].mxu1  ;;  %v2233_v29 = vpack.i.b16 %v2223_v36, %v2223_v36 }
0x13b5   :  { %v3429_v54 = vpack.c.bf16 %v2054_v51, %v2050_v43  ;;  %v3431_v55 = vpack.c.bf16 %v2097_v52, %v2093_v44  ;;  %v2226_v44 = vpack.i.b16 %v2215_v30, %v2215_v30  ;;  %v3524_v51 = vrot.slane %v2247_v39, %v3105_v11 }
0x13b6   :  { %2174 = vrot.lane.b32.xlu1 %v3425_v48, %s2999_s20  ;;  %2107 = vrot.lane.b32.xlu0 %v3425_v48, %s3001_s7  ;;  %v3527_v52 = vrot.slane %v2233_v29, %v3105_v11 }
0x13b7   :  { %v3530_v57 = vrot.slane %v2226_v44, %v3105_v11 }
0x13ba   :  { %2178 = vrot.lane.b32.xlu1 %v3427_v50, %s2999_s20  ;;  %2111 = vrot.lane.b32.xlu0 %v3427_v50, %s3001_s7 }
0x13be   :  { %2258 = vrot.lane.b32.xlu1 %v3425_v48, %s2968_s26  ;;  %2190 = vrot.lane.b32.xlu0 %v3425_v48, %s2989_s25 }
0x13c2   :  { %2262 = vrot.lane.b32.xlu1 %v3427_v50, %s2968_s26  ;;  %2194 = vrot.lane.b32.xlu0 %v3427_v50, %s2989_s25 }
0x13c6   :  { %2283 = vrot.lane.b32.xlu0 %v3427_v50, %s2980_s18  ;;  %2109 = vrot.lane.b32.xlu1 %v3429_v54, %s3001_s7  ;;  %s3008_s7 = smov 109  }
0x13ca   :  { %2279 = vrot.lane.b32.xlu0 %v3425_v48, %s2980_s18  ;;  %2192 = vrot.lane.b32.xlu1 %v3429_v54, %s2989_s25 }
0x13ce   :  { %2176 = vrot.lane.b32.xlu0 %v3429_v54, %s2999_s20  ;;  %2281 = vrot.lane.b32.xlu1 %v3429_v54, %s2980_s18  ;;  %s2536_s20 = sld [smem:[%s3584_s0 + %s3009_s13]]  }
0x13d2   :  { %2260 = vrot.lane.b32.xlu0 %v3429_v54, %s2968_s26  ;;  %2285 = vrot.lane.b32.xlu1 %v3431_v55, %s2980_s18 }
0x13d4   :  { %v2654_v59 = vld.sshfl [vmem:[%s2536_s20] sm:$0x11 pattern:$0x75316420] }
0x13d5   :  { %v2377_v60 = vcombine.high %v2654_v59, %v2654_v59  ;;  %v3481_v1 = vrot.slane %v2654_v59, %v2383_v61 }
0x13d6   :  { %2264 = vrot.lane.b32.xlu0 %v3431_v55, %s2968_s26  ;;  %2302 = vrot.lane.b32.xlu1 %v3429_v54, %s3008_s7  ;;  %s3011_s26 = smov 23  }
0x13d7   :  { %v2391_v62 = vrot.slane %v2377_v60, %v2383_v61  ;;  %s2537_s16 = sld [smem:[%s3584_s0 + %s3011_s26]]  }
0x13d9   :  { %2658 = vmatprep.mubr.msk.bf16.mxu1 %vm578_vm9, %v2391_v62  ;;  %2657 = vmatprep.mubr.msk.bf16.mxu0 %vm578_vm9, %v2391_v62  ;;  %vm2113_vm9 = vcmask 171008  }
0x13da   :  { %2304 = vrot.lane.b32.xlu0 %v3427_v50, %s3008_s7  ;;  %2306 = vrot.lane.b32.xlu1 %v3431_v55, %s3008_s7 }
0x13dd   :  { %v2363_v2 = vld [vmem:[%s2537_s16] sm:$0x3] }
0x13de   :  { %2300 = vrot.lane.b32.xlu0 %v3425_v48, %s3008_s7  ;;  %2324 = vrot.lane.b32.xlu1 %v3429_v54, %s2972_s9 }
0x13e2   :  { %2326 = vrot.lane.b32.xlu0 %v3427_v50, %s2972_s9  ;;  %2328 = vrot.lane.b32.xlu1 %v3431_v55, %s2972_s9 }
0x13e6   :  { %2322 = vrot.lane.b32.xlu0 %v3425_v48, %s2972_s9  ;;  %2342 = vrot.lane.b32.xlu1 %v3429_v54, %s3012_s17  ;;  %s3014_s9 = smov 33  }
0x13e7   :  { %s2547_s10 = sld [smem:[%s3584_s0 + %s3014_s9]]  }
0x13ea   :  { %2344 = vrot.lane.b32.xlu0 %v3427_v50, %s3012_s17  ;;  %2346 = vrot.lane.b32.xlu1 %v3431_v55, %s3012_s17 }
0x13ee   :  { %2340 = vrot.lane.b32.xlu0 %v3425_v48, %s3012_s17  ;;  %2366 = vperm.xlu1 %2826, %v2363_v2  }
0x1428   :  { %v2175_v13 = vpop.permute.xlu1 %2174  ;;  %v2108_v15 = vpop.permute.xlu0 %2107 }
0x1429   :  { %v2121_v37 = vsel %vm2113_vm9, 0, %v2108_v15 }
0x142a   :  { %v2170_v43 = vmul.bf16 %v3516_v14, %v2121_v37 }
0x142c   :  { %v2179_v18 = vpop.permute.xlu1 %2178  ;;  %v2112_v19 = vpop.permute.xlu0 %2111 }
0x142d   :  { %v2173_v9 = vmul.bf16 %v3503_v16, %v2112_v19 }
0x142f   :  { %2437 = vmatprep.subr.bf16.mxu1 %v2173_v9 }
0x1430   :  { %v2259_v63 = vpop.permute.xlu1 %2258  ;;  %v2191_v22 = vpop.permute.xlu0 %2190 }
0x1431   :  { %v2204_v0 = vsel %vm2196_vm3, 0, %v2191_v22  ;;  %v2273_v49 = vsel %vm523_vm13, 0, %v2259_v63 }
0x1432   :  { %v2253_v10 = vmul.bf16 %v3530_v57, %v2204_v0 }
0x1434   :  { %v2263_v31 = vpop.permute.xlu1 %2262  ;;  %v2195_v32 = vpop.permute.xlu0 %2194 }
0x1435   :  { %v2256_v61 = vmul.bf16 %v3524_v51, %v2195_v32 }
0x1438   :  { %v3518_v25 = vpop.permute.xlu0 %2283  ;;  %v2110_v38 = vpop.permute.xlu1 %2109 }
0x1439   :  { %v2114_v40 = vsel %vm2113_vm9, %v2108_v15, %v2110_v38  ;;  %v2115_v41 = vsel %vm2113_vm9, %v2110_v38, %v2112_v19  ;;  %vm2509_vm9 = vmor %vm2508_vm15, %vm2507_vm12 }
0x143a   :  { %v2171_v42 = vmul.bf16 %v3510_v35, %v2114_v40  ;;  %v2172_v27 = vmul.bf16 %v3513_v34, %v2115_v41 }
0x143c   :  { %v2280_v45 = vpop.permute.xlu0 %2279  ;;  %2396 = vmatprep.subr.bf16.mxu0 %v2171_v42  ;;  %2438 = vmatpush1.bf16.msra.mxu1 %v2172_v27  ;;  %v2193_v46 = vpop.permute.xlu1 %2192 }
0x143d   :  { %2397 = vmatpush1.bf16.msra.mxu0 %v2170_v43  ;;  %2439 = vmatprep.subr.bf16.mxu1 %v2179_v18  ;;  %v2197_v56 = vsel %vm2196_vm3, %v2191_v22, %v2193_v46  ;;  %v2198_v62 = vsel %vm2196_vm3, %v2193_v46, %v2195_v32  ;;  %v2361_v43 = vmul.bf16 0, %v3524_v51 }
0x143e   :  { %v2254_v5 = vmul.bf16 %v3527_v52, %v2197_v56  ;;  %v2255_v6 = vmul.bf16 %v3533_v58, %v2198_v62 }
0x1440   :  { %v2177_v59 = vpop.permute.xlu0 %2176  ;;  %v2282_v60 = vpop.permute.xlu1 %2281 }
0x1441   :  { %v2182_v2 = vsel %vm2180_vm2, %v2177_v59, %v2179_v18  ;;  %v2181_v4 = vsel %vm2180_vm2, %v2175_v13, %v2177_v59  ;;  %v2275_v18 = vmul.bf16 %v2273_v49, %v3516_v14  ;;  %v2288_v9 = vsel %vm1338_vm6, %v2282_v60, %v3518_v25 }
0x1442   :  { %2398 = vmatprep.subr.bf16.mxu0 %v2181_v4  ;;  %2440 = vmatpush1.bf16.msra.mxu1 %v2182_v2  ;;  %v2287_v24 = vsel %vm1338_vm6, %v2280_v45, %v2282_v60  ;;  %v2297_v26 = vmul.bf16 %v2288_v9, %v3527_v52 }
0x1443   :  { %2656 = vmatpush1.bf16.msk.msra.mxu0 %vm2655_vm0, %v2175_v13  ;;  %2441 = vmatprep.subr.bf16.mxu1 %v2256_v61  ;;  %v2296_v33 = vmul.bf16 %v2287_v24, %v3530_v57 }
0x1444   :  { %v2261_v7 = vpop.permute.xlu0 %2260  ;;  %2400 = vmatprep.subr.bf16.mxu0 %v2254_v5  ;;  %v2286_v11 = vpop.permute.xlu1 %2285 }
0x1445   :  { %v2266_v12 = vsel %vm523_vm13, %v2259_v63, %v2261_v7  ;;  %v2267_v17 = vsel %vm523_vm13, %v2261_v7, %v2263_v31  ;;  %v2294_v23 = vsel %vm530_vm14, %v2286_v11, 0  ;;  %v2289_v30 = vsel %vm1338_vm6, %v3518_v25, %v2286_v11 }
0x1446   :  { %v2276_v15 = vmul.bf16 %v2266_v12, %v3510_v35  ;;  %2442 = vmatpush1.bf16.msra.mxu1 %v2255_v6  ;;  %v2277_v21 = vmul.bf16 %v2267_v17, %v3513_v34  ;;  %v2298_v25 = vmul.bf16 %v2289_v30, %v3533_v58  ;;  %vm2330_vm14 = vcmask 883712  }
0x1447   :  { %2401 = vmatpush1.bf16.msra.mxu0 %v2253_v10  ;;  %vm2336_vm6 = vcmask 1014784  }
0x1448   :  { %v2265_v47 = vpop.permute.xlu0 %2264  ;;  %2402 = vmatprep.subr.bf16.mxu0 %v2276_v15  ;;  %v2303_v13 = vpop.permute.xlu1 %2302 }
0x1449   :  { %v2268_v19 = vsel %vm523_vm13, %v2263_v31, %v2265_v47  ;;  %vm2314_vm13 = vcmask 1022976  }
0x144a   :  { %v2278_v20 = vmul.bf16 %v2268_v19, %v3503_v16 }
0x144b   :  { %2403 = vmatpush1.bf16.msra.mxu0 %v2275_v18 }
0x144c   :  { %v2305_v63 = vpop.permute.xlu0 %2304  ;;  %2404 = vmatprep.subr.bf16.mxu0 %v3429_v54  ;;  %2443 = vmatprep.subr.bf16.mxu1 %v2278_v20  ;;  %v2307_v22 = vpop.permute.xlu1 %2306  ;;  %v2299_v54 = vmul.bf16 %v2294_v23, %v3524_v51 }
0x144d   :  { %2444 = vmatpush1.bf16.msra.mxu1 %v2277_v21  ;;  %v2310_v28 = vsel %vm2308_vm4, %v2303_v13, %v2305_v63  ;;  %v2311_v36 = vsel %vm2308_vm4, %v2305_v63, %v2307_v22 }
0x144e   :  { %2445 = vmatprep.subr.bf16.mxu1 %v3431_v55  ;;  %v2319_v55 = vmul.bf16 %v2310_v28, %v3510_v35  ;;  %v2316_v38 = vsel %vm2314_vm13, %v2311_v36, 0 }
0x144f   :  { %2405 = vmatpush1.bf16.msra.mxu0 %v3425_v48  ;;  %v2321_v48 = vmul.bf16 0, %v3503_v16 }
0x1450   :  { %v2301_v31 = vpop.permute.xlu0 %2300  ;;  %2406 = vmatprep.subr.bf16.mxu0 %v2297_v26  ;;  %v2325_v32 = vpop.permute.xlu1 %2324 }
0x1451   :  { %2446 = vmatpush1.bf16.msra.mxu1 %v3427_v50  ;;  %v2309_v37 = vsel %vm2308_vm4, %v2301_v31, %v2303_v13  ;;  %v2320_v50 = vmul.bf16 %v2316_v38, %v3513_v34 }
0x1452   :  { %2447 = vmatprep.subr.bf16.mxu1 %v2299_v54  ;;  %v2318_v41 = vmul.bf16 %v2309_v37, %v3516_v14 }
0x1453   :  { %2407 = vmatpush1.bf16.msra.mxu0 %v2296_v33 }
0x1454   :  { %v2327_v39 = vpop.permute.xlu0 %2326  ;;  %2408 = vmatprep.subr.bf16.mxu0 %v2319_v55  ;;  %v2329_v40 = vpop.permute.xlu1 %2328 }
0x1455   :  { %2448 = vmatpush1.bf16.msra.mxu1 %v2298_v25  ;;  %v2332_v35 = vsel %vm2330_vm14, %v2325_v32, %v2327_v39  ;;  %v2333_v16 = vsel %vm2330_vm14, %v2327_v39, %v2329_v40 }
0x1456   :  { %2449 = vmatprep.subr.bf16.mxu1 %v2321_v48  ;;  %v2338_v14 = vsel %vm2336_vm6, %v2333_v16, 0 }
0x1457   :  { %2409 = vmatpush1.bf16.msra.mxu0 %v2318_v41 }
0x1458   :  { %v2323_v42 = vpop.permute.xlu0 %2322  ;;  %2410 = vmatprep.subr.bf16.mxu0 %v2332_v35  ;;  %v2343_v27 = vpop.permute.xlu1 %2342 }
0x1459   :  { %v2331_v29 = vsel %vm2330_vm14, %v2323_v42, %v2325_v32  ;;  %2450 = vmatpush1.bf16.msra.mxu1 %v2320_v50 }
0x145a   :  { %2451 = vmatprep.subr.bf16.mxu1 %v2978_v53 }
0x145b   :  { %2411 = vmatpush1.bf16.msra.mxu0 %v2331_v29 }
0x145c   :  { %v2345_v44 = vpop.permute.xlu0 %2344  ;;  %v2347_v45 = vpop.permute.xlu1 %2346 }
0x145d   :  { %v2350_v34 = vsel %vm2348_vm7, %v2343_v27, %v2345_v44  ;;  %v2351_v3 = vsel %vm2348_vm7, %v2345_v44, %v2347_v45  ;;  %2452 = vmatpush1.bf16.msra.mxu1 %v2338_v14 }
0x145e   :  { %v2359_v46 = vmul.bf16 %v2350_v34, %v3527_v52  ;;  %v2356_v56 = vsel %vm2354_vm8, %v2351_v3, 0  ;;  %2453 = vmatprep.subr.bf16.mxu1 %v2361_v43 }
0x145f   :  { %v2360_v59 = vmul.bf16 %v2356_v56, %v3533_v58 }
0x1460   :  { %v2341_v60 = vpop.permute.xlu0 %2340  ;;  %2412 = vmatprep.subr.bf16.mxu0 %v2359_v46 }
0x1461   :  { %v2349_v53 = vsel %vm2348_vm7, %v2341_v60, %v2343_v27  ;;  %2454 = vmatpush1.bf16.msra.mxu1 %v2360_v59 }
0x1462   :  { %v2358_v51 = vmul.bf16 %v2349_v53, %v3530_v57 }
0x1464   :  { %2413 = vmatpush1.bf16.msra.mxu0 %v2358_v51  ;;  %2470 = vmatmul.mubr.bf16.vlgmr.msra.gmra.mrb[24].mxu1 %v3481_v1 }
0x1467   :  { %2429 = vmatmul.mubr.bf16.vlgmr.msra.gmra.mrb[24].mxu0 %v3481_v1 }
0x146d   :  { %v2367_v61 = vpop.permute.xlu1 %2366 }
0x1537   :  { %v2471_v62 = vpop.f32.mrb[24].mxu1 }
0x1538   :  { %v2472_v2 = vadd.f32 %v2471_v62, %v2367_v61  ;;  %v2473_v52 = vpop.f32.mrb[25].mxu1 }
0x1539   :  { %v2474_v4 = vadd.f32 %v2473_v52, %v2367_v61  ;;  %v2475_v0 = vpop.f32.mrb[26].mxu1 }
0x153a   :  { %v2480_v58 = vmax.f32 %v2472_v2, 0.0  ;;  %v2430_v5 = vpop.f32.mrb[24].mxu0  ;;  %v2476_v6 = vpop.f32.mrb[27].mxu1 }
0x153b   :  { %v2481_v7 = vmax.f32 %v2474_v4, 0.0  ;;  %v2431_v11 = vadd.f32 %v2430_v5, %v2367_v61  ;;  %v2432_v10 = vpop.f32.mrb[25].mxu0 }
0x153c   :  { %v2433_v12 = vadd.f32 %v2432_v10, %v2367_v61  ;;  %v2434_v57 = vpop.f32.mrb[26].mxu0 }
0x153d   :  { %v2487_v49 = vcombine.low %v2480_v58, %v2481_v7  ;;  %v2478_v1 = vmax.f32 %v2431_v11, 0.0  ;;  %v2435_v15 = vpop.f32.mrb[27].mxu0 }
0x153e   :  { %v2479_v17 = vmax.f32 %v2433_v12, 0.0 }
0x153f   :  { %v2501_v13 = vrot.slane %v2487_v49, %v3499_v8 }
0x1540   :  { %v2486_v47 = vcombine.low %v2478_v1, %v2479_v17 }
0x1542   :  { %v2494_v18 = vrot.slane %v2486_v47, %v3499_v8 }
0x1544   :  { %v2502_v19 = vcombine.low %v2494_v18, %v2501_v13 }
0x1546   :  { %2510 = vst.msk [vmem:[%s2547_s10] sm:$0xff] %vm2509_vm9, %v2502_v19 }

</bundles_post_ra>
